<compile_context>
chip_gen: v6e
topology: v6e:2x2x1
jax: 0.10.0
libtpu: 0.0.40
codegen_flags: <defaults>
</compile_context>

<pallas_src>
import functools

import jax
import jax.numpy as jnp
from jax import lax
from jax.experimental import pallas as pl
from jax.experimental.pallas import tpu as pltpu


# ------------------------------ fused kernel ------------------------------
def _fused_encoder_kernel(num_layers, k_list, d, T, TB, V,
                          tok_ref, len_ref, embed_ref, *refs):
    # tok_ref:   (1, T*TB, 1) int32, time-major flattened tokens for this tile
    # len_ref:   (1, TB, 1)   int32, caption lengths for this tile
    # embed_ref: (V, K)       bfloat16 embedding table (VMEM resident)
    # refs: [w_0, b_0, ..., w_{L-1}, b_{L-1}, o_ref, g_scr, (h_scr)]
    #   w_l: (n_in_l, k_l*d) bf16, columns = [cand | forget | reset | (highway)]
    #   b_l: (1, 2*d) f32, columns = [b_f | b_r]
    w_refs = [refs[2 * l] for l in range(num_layers)]
    b_refs = [refs[2 * l + 1] for l in range(num_layers)]
    o_ref = refs[2 * num_layers]
    scr = list(refs[2 * num_layers + 1:])
    g_scr = scr[0]                               # (T*TB, k_max*d) f32
    h_scr = scr[1] if len(scr) > 1 else None     # (T*TB, d) f32

    M = T * TB
    tok = tok_ref[0]                             # (M, 1) int32, time-major
    tgt = len_ref[0] - 1                         # (TB, 1) int32

    # ---- embedding lookup as a bf16 one-hot matmul (exact row select) ----
    vocab_iota = lax.broadcasted_iota(jnp.int32, (M, V), 1)
    onehot = (vocab_iota == tok).astype(jnp.bfloat16)          # (M, V)
    x0 = jnp.dot(onehot, embed_ref[...],
                 preferred_element_type=jnp.float32)           # (M, K) f32
    x_bf = x0.astype(jnp.bfloat16)

    if k_list[0] == 3:
        # Layer-0 highway uses the (f32) layer input when K == d.
        h_scr[...] = x0

    sel = jnp.zeros((TB, d), jnp.float32)

    for l in range(num_layers):
        k = k_list[l]
        w_ref = w_refs[l]
        b_ref = b_refs[l]

        if l > 0:
            x_bf = h_scr[...].astype(jnp.bfloat16)   # previous layer output

        # One wide MXU matmul for every gate of every timestep; stream the
        # result straight into VMEM scratch (keeps vreg live ranges short).
        g_scr[:, pl.ds(0, k * d)] = jnp.dot(
            x_bf, w_ref[...], preferred_element_type=jnp.float32)

        # Hoisted bias + sigmoid on the forget / reset column slabs.
        g_scr[:, pl.ds(d, d)] = jax.nn.sigmoid(
            g_scr[:, pl.ds(d, d)] + b_ref[:, pl.ds(0, d)])
        g_scr[:, pl.ds(2 * d, d)] = jax.nn.sigmoid(
            g_scr[:, pl.ds(2 * d, d)] + b_ref[:, pl.ds(d, d)])

        is_last = (l == num_layers - 1)
        c = jnp.zeros((TB, d), jnp.float32)

        # Fully unrolled recurrence; only FMAs + tanh per step, operands are
        # per-timestep (TB, d) row slices loaded from scratch (sublane/lane
        # aligned: TB = 8, d multiple of 128).
        # TODO(synk): on v6e/v7x the sigmoid/tanh could run in bf16 (bf16 EUP)
        #             for ~2x transcendental throughput; kept f32 so v5e is
        #             also correct/fast.
        for t in range(T):
            rows = pl.ds(t * TB, TB)
            g0_t = g_scr[rows, pl.ds(0, d)]
            f_t = g_scr[rows, pl.ds(d, d)]
            r_t = g_scr[rows, pl.ds(2 * d, d)]
            if k == 4:
                xp_t = g_scr[rows, pl.ds(3 * d, d)]
            else:
                xp_t = h_scr[rows, :]            # layer input (highway path)
            c = (c - g0_t) * f_t + g0_t          # f*c_prev + (1-f)*g0
            h_t = (jnp.tanh(c) - xp_t) * r_t + xp_t
            if is_last:
                # Accumulate the last valid timestep directly; never write the
                # full (T, TB, d) output of the final layer.
                sel = jnp.where(tgt == t, h_t, sel)
            else:
                h_scr[rows, :] = h_t             # inter-layer h stays in VMEM

    # ---- L2 normalization epilogue (rsqrt on the EUP, eps for safety) ----
    sumsq = jnp.sum(sel * sel, axis=1, keepdims=True)
    o_ref[...] = sel * lax.rsqrt(sumsq + 1e-12)


# --------------------------------- wrapper ---------------------------------
def encoder_text_fused(params, tokens, lengths):
    B, T = tokens.shape
    V, K = params["embed"].shape
    d = params["layers"][0][1].shape[1] // 2
    num_layers = len(params["layers"])
    k_list = tuple(int(w.shape[1]) // d for (w, _) in params["layers"])
    k_max = max(k_list)

    TB = 8 if B % 8 == 0 else B                  # batch tile per grid step
    G = B // TB
    M = T * TB

    # Time-major tokens per batch tile: row r = t*TB + b (mirrors x.transpose(1,0)).
    tok = tokens.astype(jnp.int32).reshape(G, TB, T)
    tok_tm = jnp.transpose(tok, (0, 2, 1)).reshape(G, M, 1)
    len_t = lengths.astype(jnp.int32).reshape(G, TB, 1)

    flat_params = []
    for (w, b) in params["layers"]:
        flat_params.append(w)
        flat_params.append(b)

    kernel = functools.partial(_fused_encoder_kernel,
                               num_layers, k_list, d, T, TB, V)

    in_specs = [
        pl.BlockSpec((1, M, 1), lambda i: (i, 0, 0)),    # tokens (per tile)
        pl.BlockSpec((1, TB, 1), lambda i: (i, 0, 0)),   # lengths (per tile)
        pl.BlockSpec((V, K), lambda i: (0, 0)),          # embed table (resident)
    ]
    for (w, b) in params["layers"]:
        in_specs.append(pl.BlockSpec(w.shape, lambda i: (0, 0)))
        in_specs.append(pl.BlockSpec(b.shape, lambda i: (0, 0)))

    need_h = (num_layers > 1) or (k_list[0] == 3)
    scratch_shapes = [pltpu.VMEM((M, k_max * d), jnp.float32)]
    if need_h:
        scratch_shapes.append(pltpu.VMEM((M, d), jnp.float32))

    return pl.pallas_call(
        kernel,
        out_shape=jax.ShapeDtypeStruct((B, d), jnp.float32),
        grid=(G,),
        in_specs=in_specs,
        out_specs=pl.BlockSpec((TB, d), lambda i: (i, 0)),
        scratch_shapes=scratch_shapes,
        compiler_params=pltpu.CompilerParams(
            dimension_semantics=("parallel",)),
    )(tok_tm, len_t, params["embed"], *flat_params)


# --------------------------- parameters / glue ---------------------------
def init_params(key, vocab_size, K, d, num_layers):
    keys = jax.random.split(key, 1 + num_layers)
    embed = jax.random.uniform(keys[0], (vocab_size, K), jnp.float32, -0.1, 0.1)
    params = {"embed": embed.astype(jnp.bfloat16)}      # bf16 at MXU boundary
    layers = []
    n_in = K
    for l in range(num_layers):
        k = 4 if n_in != d else 3
        scale = (3.0 / n_in) ** 0.5
        # Gate-concat layout (n_in, k*d): [candidate | forget | reset | (highway)].
        w = jax.random.uniform(keys[1 + l], (n_in, k * d),
                               jnp.float32, -scale, scale)
        b = jnp.zeros((1, 2 * d), jnp.float32)          # [b_f | b_r]
        layers.append((w.astype(jnp.bfloat16), b))
        n_in = d
    params["layers"] = layers
    return params


@jax.jit
def encoder_text_forward(params, tokens, lengths):
    return encoder_text_fused(params, tokens, lengths)


# ---------------------------------- main ----------------------------------
if __name__ == "__main__":
    B, T, K, D, NUM_LAYERS, VOCAB = 16, 8, 128, 256, 2, 64

    key = jax.random.PRNGKey(0)
    kp, kt, kl = jax.random.split(key, 3)

    params = init_params(kp, VOCAB, K, D, NUM_LAYERS)
    tokens = jax.random.randint(kt, (B, T), 0, VOCAB, dtype=jnp.int32)
    lengths = jax.random.randint(kl, (B,), 1, T + 1, dtype=jnp.int32)

    out = encoder_text_forward(params, tokens, lengths)
    out = jax.block_until_ready(out)
    assert out.shape == (B, D) and out.dtype == jnp.float32
    assert bool(jnp.all(jnp.isfinite(out)))
    print("KERNEL_OK")
</pallas_src>

<mosaic_0001>
module attributes {stable_mosaic.version = 11 : i64} {
  func.func @_fused_encoder_kernel(%arg0: i32, %arg1: memref<1x64x1xi32, #tpu.memory_space<vmem>>, %arg2: memref<1x8x1xi32, #tpu.memory_space<vmem>>, %arg3: memref<64x128xbf16, #tpu.memory_space<vmem>>, %arg4: memref<128x1024xbf16, #tpu.memory_space<vmem>>, %arg5: memref<1x512xf32, #tpu.memory_space<vmem>>, %arg6: memref<256x768xbf16, #tpu.memory_space<vmem>>, %arg7: memref<1x512xf32, #tpu.memory_space<vmem>>, %arg8: memref<8x256xf32, #tpu.memory_space<vmem>>, %arg9: memref<64x1024xf32, #tpu.memory_space<vmem>>, %arg10: memref<64x256xf32, #tpu.memory_space<vmem>>) attributes {dimension_semantics = [#tpu.dimension_semantics<parallel>], iteration_bounds = array<i64: 2>, scalar_prefetch = 0 : i64, scratch_operands = 2 : i64, tpu.core_type = #tpu.core_type<tc>, window_params = [{transform_indices = @transform_0, window_bounds = array<i64: 1, 64, 1>}, {transform_indices = @transform_1, window_bounds = array<i64: 1, 8, 1>}, {pipeline_mode = #tpu.pipeline_mode<synchronous>, transform_indices = @transform_2, window_bounds = array<i64: 64, 128>}, {pipeline_mode = #tpu.pipeline_mode<synchronous>, transform_indices = @transform_3, window_bounds = array<i64: 128, 1024>}, {pipeline_mode = #tpu.pipeline_mode<synchronous>, transform_indices = @transform_4, window_bounds = array<i64: 1, 512>}, {pipeline_mode = #tpu.pipeline_mode<synchronous>, transform_indices = @transform_5, window_bounds = array<i64: 256, 768>}, {pipeline_mode = #tpu.pipeline_mode<synchronous>, transform_indices = @transform_6, window_bounds = array<i64: 1, 512>}, {transform_indices = @transform_7, window_bounds = array<i64: 8, 256>}]} {
    %c0 = arith.constant 0 : index
    %c0_0 = arith.constant 0 : index
    %c0_1 = arith.constant 0 : index
    %0 = vector.load %arg1[%c0, %c0_0, %c0_1] : memref<1x64x1xi32, #tpu.memory_space<vmem>>, vector<1x64x1xi32>
    %1 = vector.shape_cast %0 : vector<1x64x1xi32> to vector<64x1xi32>
    %c0_2 = arith.constant 0 : index
    %c0_3 = arith.constant 0 : index
    %c0_4 = arith.constant 0 : index
    %2 = vector.load %arg2[%c0_2, %c0_3, %c0_4] : memref<1x8x1xi32, #tpu.memory_space<vmem>>, vector<1x8x1xi32>
    %3 = vector.shape_cast %2 : vector<1x8x1xi32> to vector<8x1xi32>
    %c1_i32 = arith.constant 1 : i32
    %4 = vector.broadcast %c1_i32 : i32 to vector<8x1xi32>
    %5 = arith.subi %3, %4 : vector<8x1xi32>
    %6 = tpu.iota {dimensions = array<i32: 1>} : vector<64x64xi32>
    %7 = vector.broadcast %1 : vector<64x1xi32> to vector<64x64xi32>
    %8 = arith.cmpi eq, %6, %7 : vector<64x64xi32>
    %9 = arith.extui %8 : vector<64x64xi1> to vector<64x64xi32>
    %10 = arith.sitofp %9 : vector<64x64xi32> to vector<64x64xf32>
    %11 = arith.truncf %10 : vector<64x64xf32> to vector<64x64xbf16>
    %c0_5 = arith.constant 0 : index
    %c0_6 = arith.constant 0 : index
    %12 = vector.load %arg3[%c0_5, %c0_6] : memref<64x128xbf16, #tpu.memory_space<vmem>>, vector<64x128xbf16>
    %cst = arith.constant dense<0.000000e+00> : vector<64x128xf32>
    %13 = tpu.matmul %11, %12, %cst {dimension_numbers = #tpu.dot_dimension_numbers<[1], [0], [0], [1], [0, 0, 1, 1], [], []>} : vector<64x64xbf16>, vector<64x128xbf16>, vector<64x128xf32> -> vector<64x128xf32>
    %14 = arith.truncf %13 : vector<64x128xf32> to vector<64x128xbf16>
    %cst_7 = arith.constant 0.000000e+00 : f32
    %15 = vector.broadcast %cst_7 : f32 to vector<8x256xf32>
    %c0_8 = arith.constant 0 : index
    %c0_9 = arith.constant 0 : index
    %16 = vector.load %arg4[%c0_8, %c0_9] : memref<128x1024xbf16, #tpu.memory_space<vmem>>, vector<128x1024xbf16>
    %cst_10 = arith.constant dense<0.000000e+00> : vector<64x1024xf32>
    %17 = tpu.matmul %14, %16, %cst_10 {dimension_numbers = #tpu.dot_dimension_numbers<[1], [0], [0], [1], [0, 0, 1, 1], [], []>} : vector<64x128xbf16>, vector<128x1024xbf16>, vector<64x1024xf32> -> vector<64x1024xf32>
    %c0_11 = arith.constant 0 : index
    %c0_12 = arith.constant 0 : index
    %18 = vector.load %arg9[%c0_11, %c0_12] : memref<64x1024xf32, #tpu.memory_space<vmem>>, vector<64x1024xf32>
    tpu.vector_store %arg9[%c0_11, %c0_12], %17 {strides = array<i32>} : memref<64x1024xf32, #tpu.memory_space<vmem>>, vector<64x1024xf32>,
    %c0_13 = arith.constant 0 : index
    %c256 = arith.constant 256 : index
    %19 = vector.load %arg9[%c0_13, %c256] : memref<64x1024xf32, #tpu.memory_space<vmem>>, vector<64x256xf32>
    %c0_14 = arith.constant 0 : index
    %c0_15 = arith.constant 0 : index
    %20 = vector.load %arg5[%c0_14, %c0_15] : memref<1x512xf32, #tpu.memory_space<vmem>>, vector<1x256xf32>
    %21 = vector.broadcast %20 : vector<1x256xf32> to vector<64x256xf32>
    %22 = arith.addf %19, %21 : vector<64x256xf32>
    %23 = arith.negf %22 : vector<64x256xf32>
    %24 = math.exp %23 : vector<64x256xf32>
    %cst_16 = arith.constant 1.000000e+00 : f32
    %25 = vector.broadcast %cst_16 : f32 to vector<64x256xf32>
    %26 = arith.addf %25, %24 : vector<64x256xf32>
    %27 = arith.divf %25, %26 : vector<64x256xf32>
    %c0_17 = arith.constant 0 : index
    %c256_18 = arith.constant 256 : index
    %28 = vector.load %arg9[%c0_17, %c256_18] : memref<64x1024xf32, #tpu.memory_space<vmem>>, vector<64x256xf32>
    tpu.vector_store %arg9[%c0_17, %c256_18], %27 {strides = array<i32>} : memref<64x1024xf32, #tpu.memory_space<vmem>>, vector<64x256xf32>,
    %c0_19 = arith.constant 0 : index
    %c512 = arith.constant 512 : index
    %29 = vector.load %arg9[%c0_19, %c512] : memref<64x1024xf32, #tpu.memory_space<vmem>>, vector<64x256xf32>
    %c0_20 = arith.constant 0 : index
    %c256_21 = arith.constant 256 : index
    %30 = vector.load %arg5[%c0_20, %c256_21] : memref<1x512xf32, #tpu.memory_space<vmem>>, vector<1x256xf32>
    %31 = vector.broadcast %30 : vector<1x256xf32> to vector<64x256xf32>
    %32 = arith.addf %29, %31 : vector<64x256xf32>
    %33 = arith.negf %32 : vector<64x256xf32>
    %34 = math.exp %33 : vector<64x256xf32>
    %cst_22 = arith.constant 1.000000e+00 : f32
    %35 = vector.broadcast %cst_22 : f32 to vector<64x256xf32>
    %36 = arith.addf %35, %34 : vector<64x256xf32>
    %37 = arith.divf %35, %36 : vector<64x256xf32>
    %c0_23 = arith.constant 0 : index
    %c512_24 = arith.constant 512 : index
    %38 = vector.load %arg9[%c0_23, %c512_24] : memref<64x1024xf32, #tpu.memory_space<vmem>>, vector<64x256xf32>
    tpu.vector_store %arg9[%c0_23, %c512_24], %37 {strides = array<i32>} : memref<64x1024xf32, #tpu.memory_space<vmem>>, vector<64x256xf32>,
    %cst_25 = arith.constant 0.000000e+00 : f32
    %39 = vector.broadcast %cst_25 : f32 to vector<8x256xf32>
    %c0_26 = arith.constant 0 : index
    %c0_27 = arith.constant 0 : index
    %40 = vector.load %arg9[%c0_26, %c0_27] : memref<64x1024xf32, #tpu.memory_space<vmem>>, vector<8x256xf32>
    %c0_28 = arith.constant 0 : index
    %c256_29 = arith.constant 256 : index
    %41 = vector.load %arg9[%c0_28, %c256_29] : memref<64x1024xf32, #tpu.memory_space<vmem>>, vector<8x256xf32>
    %c0_30 = arith.constant 0 : index
    %c512_31 = arith.constant 512 : index
    %42 = vector.load %arg9[%c0_30, %c512_31] : memref<64x1024xf32, #tpu.memory_space<vmem>>, vector<8x256xf32>
    %c0_32 = arith.constant 0 : index
    %c768 = arith.constant 768 : index
    %43 = vector.load %arg9[%c0_32, %c768] : memref<64x1024xf32, #tpu.memory_space<vmem>>, vector<8x256xf32>
    %44 = arith.subf %39, %40 : vector<8x256xf32>
    %45 = arith.mulf %44, %41 : vector<8x256xf32>
    %46 = arith.addf %45, %40 : vector<8x256xf32>
    %47 = math.tanh %46 : vector<8x256xf32>
    %48 = arith.subf %47, %43 : vector<8x256xf32>
    %49 = arith.mulf %48, %42 : vector<8x256xf32>
    %50 = arith.addf %49, %43 : vector<8x256xf32>
    %c0_33 = arith.constant 0 : index
    %c0_34 = arith.constant 0 : index
    %51 = vector.load %arg10[%c0_33, %c0_34] : memref<64x256xf32, #tpu.memory_space<vmem>>, vector<8x256xf32>
    tpu.vector_store %arg10[%c0_33, %c0_34], %50 {strides = array<i32>} : memref<64x256xf32, #tpu.memory_space<vmem>>, vector<8x256xf32>,
    %c8 = arith.constant 8 : index
    %c0_35 = arith.constant 0 : index
    %52 = vector.load %arg9[%c8, %c0_35] : memref<64x1024xf32, #tpu.memory_space<vmem>>, vector<8x256xf32>
    %c8_36 = arith.constant 8 : index
    %c256_37 = arith.constant 256 : index
    %53 = vector.load %arg9[%c8_36, %c256_37] : memref<64x1024xf32, #tpu.memory_space<vmem>>, vector<8x256xf32>
    %c8_38 = arith.constant 8 : index
    %c512_39 = arith.constant 512 : index
    %54 = vector.load %arg9[%c8_38, %c512_39] : memref<64x1024xf32, #tpu.memory_space<vmem>>, vector<8x256xf32>
    %c8_40 = arith.constant 8 : index
    %c768_41 = arith.constant 768 : index
    %55 = vector.load %arg9[%c8_40, %c768_41] : memref<64x1024xf32, #tpu.memory_space<vmem>>, vector<8x256xf32>
    %56 = arith.subf %46, %52 : vector<8x256xf32>
    %57 = arith.mulf %56, %53 : vector<8x256xf32>
    %58 = arith.addf %57, %52 : vector<8x256xf32>
    %59 = math.tanh %58 : vector<8x256xf32>
    %60 = arith.subf %59, %55 : vector<8x256xf32>
    %61 = arith.mulf %60, %54 : vector<8x256xf32>
    %62 = arith.addf %61, %55 : vector<8x256xf32>
    %c8_42 = arith.constant 8 : index
    %c0_43 = arith.constant 0 : index
    %63 = vector.load %arg10[%c8_42, %c0_43] : memref<64x256xf32, #tpu.memory_space<vmem>>, vector<8x256xf32>
    tpu.vector_store %arg10[%c8_42, %c0_43], %62 {strides = array<i32>} : memref<64x256xf32, #tpu.memory_space<vmem>>, vector<8x256xf32>,
    %c16 = arith.constant 16 : index
    %c0_44 = arith.constant 0 : index
    %64 = vector.load %arg9[%c16, %c0_44] : memref<64x1024xf32, #tpu.memory_space<vmem>>, vector<8x256xf32>
    %c16_45 = arith.constant 16 : index
    %c256_46 = arith.constant 256 : index
    %65 = vector.load %arg9[%c16_45, %c256_46] : memref<64x1024xf32, #tpu.memory_space<vmem>>, vector<8x256xf32>
    %c16_47 = arith.constant 16 : index
    %c512_48 = arith.constant 512 : index
    %66 = vector.load %arg9[%c16_47, %c512_48] : memref<64x1024xf32, #tpu.memory_space<vmem>>, vector<8x256xf32>
    %c16_49 = arith.constant 16 : index
    %c768_50 = arith.constant 768 : index
    %67 = vector.load %arg9[%c16_49, %c768_50] : memref<64x1024xf32, #tpu.memory_space<vmem>>, vector<8x256xf32>
    %68 = arith.subf %58, %64 : vector<8x256xf32>
    %69 = arith.mulf %68, %65 : vector<8x256xf32>
    %70 = arith.addf %69, %64 : vector<8x256xf32>
    %71 = math.tanh %70 : vector<8x256xf32>
    %72 = arith.subf %71, %67 : vector<8x256xf32>
    %73 = arith.mulf %72, %66 : vector<8x256xf32>
    %74 = arith.addf %73, %67 : vector<8x256xf32>
    %c16_51 = arith.constant 16 : index
    %c0_52 = arith.constant 0 : index
    %75 = vector.load %arg10[%c16_51, %c0_52] : memref<64x256xf32, #tpu.memory_space<vmem>>, vector<8x256xf32>
    tpu.vector_store %arg10[%c16_51, %c0_52], %74 {strides = array<i32>} : memref<64x256xf32, #tpu.memory_space<vmem>>, vector<8x256xf32>,
    %c24 = arith.constant 24 : index
    %c0_53 = arith.constant 0 : index
    %76 = vector.load %arg9[%c24, %c0_53] : memref<64x1024xf32, #tpu.memory_space<vmem>>, vector<8x256xf32>
    %c24_54 = arith.constant 24 : index
    %c256_55 = arith.constant 256 : index
    %77 = vector.load %arg9[%c24_54, %c256_55] : memref<64x1024xf32, #tpu.memory_space<vmem>>, vector<8x256xf32>
    %c24_56 = arith.constant 24 : index
    %c512_57 = arith.constant 512 : index
    %78 = vector.load %arg9[%c24_56, %c512_57] : memref<64x1024xf32, #tpu.memory_space<vmem>>, vector<8x256xf32>
    %c24_58 = arith.constant 24 : index
    %c768_59 = arith.constant 768 : index
    %79 = vector.load %arg9[%c24_58, %c768_59] : memref<64x1024xf32, #tpu.memory_space<vmem>>, vector<8x256xf32>
    %80 = arith.subf %70, %76 : vector<8x256xf32>
    %81 = arith.mulf %80, %77 : vector<8x256xf32>
    %82 = arith.addf %81, %76 : vector<8x256xf32>
    %83 = math.tanh %82 : vector<8x256xf32>
    %84 = arith.subf %83, %79 : vector<8x256xf32>
    %85 = arith.mulf %84, %78 : vector<8x256xf32>
    %86 = arith.addf %85, %79 : vector<8x256xf32>
    %c24_60 = arith.constant 24 : index
    %c0_61 = arith.constant 0 : index
    %87 = vector.load %arg10[%c24_60, %c0_61] : memref<64x256xf32, #tpu.memory_space<vmem>>, vector<8x256xf32>
    tpu.vector_store %arg10[%c24_60, %c0_61], %86 {strides = array<i32>} : memref<64x256xf32, #tpu.memory_space<vmem>>, vector<8x256xf32>,
    %c32 = arith.constant 32 : index
    %c0_62 = arith.constant 0 : index
    %88 = vector.load %arg9[%c32, %c0_62] : memref<64x1024xf32, #tpu.memory_space<vmem>>, vector<8x256xf32>
    %c32_63 = arith.constant 32 : index
    %c256_64 = arith.constant 256 : index
    %89 = vector.load %arg9[%c32_63, %c256_64] : memref<64x1024xf32, #tpu.memory_space<vmem>>, vector<8x256xf32>
    %c32_65 = arith.constant 32 : index
    %c512_66 = arith.constant 512 : index
    %90 = vector.load %arg9[%c32_65, %c512_66] : memref<64x1024xf32, #tpu.memory_space<vmem>>, vector<8x256xf32>
    %c32_67 = arith.constant 32 : index
    %c768_68 = arith.constant 768 : index
    %91 = vector.load %arg9[%c32_67, %c768_68] : memref<64x1024xf32, #tpu.memory_space<vmem>>, vector<8x256xf32>
    %92 = arith.subf %82, %88 : vector<8x256xf32>
    %93 = arith.mulf %92, %89 : vector<8x256xf32>
    %94 = arith.addf %93, %88 : vector<8x256xf32>
    %95 = math.tanh %94 : vector<8x256xf32>
    %96 = arith.subf %95, %91 : vector<8x256xf32>
    %97 = arith.mulf %96, %90 : vector<8x256xf32>
    %98 = arith.addf %97, %91 : vector<8x256xf32>
    %c32_69 = arith.constant 32 : index
    %c0_70 = arith.constant 0 : index
    %99 = vector.load %arg10[%c32_69, %c0_70] : memref<64x256xf32, #tpu.memory_space<vmem>>, vector<8x256xf32>
    tpu.vector_store %arg10[%c32_69, %c0_70], %98 {strides = array<i32>} : memref<64x256xf32, #tpu.memory_space<vmem>>, vector<8x256xf32>,
    %c40 = arith.constant 40 : index
    %c0_71 = arith.constant 0 : index
    %100 = vector.load %arg9[%c40, %c0_71] : memref<64x1024xf32, #tpu.memory_space<vmem>>, vector<8x256xf32>
    %c40_72 = arith.constant 40 : index
    %c256_73 = arith.constant 256 : index
    %101 = vector.load %arg9[%c40_72, %c256_73] : memref<64x1024xf32, #tpu.memory_space<vmem>>, vector<8x256xf32>
    %c40_74 = arith.constant 40 : index
    %c512_75 = arith.constant 512 : index
    %102 = vector.load %arg9[%c40_74, %c512_75] : memref<64x1024xf32, #tpu.memory_space<vmem>>, vector<8x256xf32>
    %c40_76 = arith.constant 40 : index
    %c768_77 = arith.constant 768 : index
    %103 = vector.load %arg9[%c40_76, %c768_77] : memref<64x1024xf32, #tpu.memory_space<vmem>>, vector<8x256xf32>
    %104 = arith.subf %94, %100 : vector<8x256xf32>
    %105 = arith.mulf %104, %101 : vector<8x256xf32>
    %106 = arith.addf %105, %100 : vector<8x256xf32>
    %107 = math.tanh %106 : vector<8x256xf32>
    %108 = arith.subf %107, %103 : vector<8x256xf32>
    %109 = arith.mulf %108, %102 : vector<8x256xf32>
    %110 = arith.addf %109, %103 : vector<8x256xf32>
    %c40_78 = arith.constant 40 : index
    %c0_79 = arith.constant 0 : index
    %111 = vector.load %arg10[%c40_78, %c0_79] : memref<64x256xf32, #tpu.memory_space<vmem>>, vector<8x256xf32>
    tpu.vector_store %arg10[%c40_78, %c0_79], %110 {strides = array<i32>} : memref<64x256xf32, #tpu.memory_space<vmem>>, vector<8x256xf32>,
    %c48 = arith.constant 48 : index
    %c0_80 = arith.constant 0 : index
    %112 = vector.load %arg9[%c48, %c0_80] : memref<64x1024xf32, #tpu.memory_space<vmem>>, vector<8x256xf32>
    %c48_81 = arith.constant 48 : index
    %c256_82 = arith.constant 256 : index
    %113 = vector.load %arg9[%c48_81, %c256_82] : memref<64x1024xf32, #tpu.memory_space<vmem>>, vector<8x256xf32>
    %c48_83 = arith.constant 48 : index
    %c512_84 = arith.constant 512 : index
    %114 = vector.load %arg9[%c48_83, %c512_84] : memref<64x1024xf32, #tpu.memory_space<vmem>>, vector<8x256xf32>
    %c48_85 = arith.constant 48 : index
    %c768_86 = arith.constant 768 : index
    %115 = vector.load %arg9[%c48_85, %c768_86] : memref<64x1024xf32, #tpu.memory_space<vmem>>, vector<8x256xf32>
    %116 = arith.subf %106, %112 : vector<8x256xf32>
    %117 = arith.mulf %116, %113 : vector<8x256xf32>
    %118 = arith.addf %117, %112 : vector<8x256xf32>
    %119 = math.tanh %118 : vector<8x256xf32>
    %120 = arith.subf %119, %115 : vector<8x256xf32>
    %121 = arith.mulf %120, %114 : vector<8x256xf32>
    %122 = arith.addf %121, %115 : vector<8x256xf32>
    %c48_87 = arith.constant 48 : index
    %c0_88 = arith.constant 0 : index
    %123 = vector.load %arg10[%c48_87, %c0_88] : memref<64x256xf32, #tpu.memory_space<vmem>>, vector<8x256xf32>
    tpu.vector_store %arg10[%c48_87, %c0_88], %122 {strides = array<i32>} : memref<64x256xf32, #tpu.memory_space<vmem>>, vector<8x256xf32>,
    %c56 = arith.constant 56 : index
    %c0_89 = arith.constant 0 : index
    %124 = vector.load %arg9[%c56, %c0_89] : memref<64x1024xf32, #tpu.memory_space<vmem>>, vector<8x256xf32>
    %c56_90 = arith.constant 56 : index
    %c256_91 = arith.constant 256 : index
    %125 = vector.load %arg9[%c56_90, %c256_91] : memref<64x1024xf32, #tpu.memory_space<vmem>>, vector<8x256xf32>
    %c56_92 = arith.constant 56 : index
    %c512_93 = arith.constant 512 : index
    %126 = vector.load %arg9[%c56_92, %c512_93] : memref<64x1024xf32, #tpu.memory_space<vmem>>, vector<8x256xf32>
    %c56_94 = arith.constant 56 : index
    %c768_95 = arith.constant 768 : index
    %127 = vector.load %arg9[%c56_94, %c768_95] : memref<64x1024xf32, #tpu.memory_space<vmem>>, vector<8x256xf32>
    %128 = arith.subf %118, %124 : vector<8x256xf32>
    %129 = arith.mulf %128, %125 : vector<8x256xf32>
    %130 = arith.addf %129, %124 : vector<8x256xf32>
    %131 = math.tanh %130 : vector<8x256xf32>
    %132 = arith.subf %131, %127 : vector<8x256xf32>
    %133 = arith.mulf %132, %126 : vector<8x256xf32>
    %134 = arith.addf %133, %127 : vector<8x256xf32>
    %c56_96 = arith.constant 56 : index
    %c0_97 = arith.constant 0 : index
    %135 = vector.load %arg10[%c56_96, %c0_97] : memref<64x256xf32, #tpu.memory_space<vmem>>, vector<8x256xf32>
    tpu.vector_store %arg10[%c56_96, %c0_97], %134 {strides = array<i32>} : memref<64x256xf32, #tpu.memory_space<vmem>>, vector<8x256xf32>,
    %c0_98 = arith.constant 0 : index
    %c0_99 = arith.constant 0 : index
    %136 = vector.load %arg10[%c0_98, %c0_99] : memref<64x256xf32, #tpu.memory_space<vmem>>, vector<64x256xf32>
    %137 = arith.truncf %136 : vector<64x256xf32> to vector<64x256xbf16>
    %c0_100 = arith.constant 0 : index
    %c0_101 = arith.constant 0 : index
    %138 = vector.load %arg6[%c0_100, %c0_101] : memref<256x768xbf16, #tpu.memory_space<vmem>>, vector<256x768xbf16>
    %cst_102 = arith.constant dense<0.000000e+00> : vector<64x768xf32>
    %139 = tpu.matmul %137, %138, %cst_102 {dimension_numbers = #tpu.dot_dimension_numbers<[1], [0], [0], [1], [0, 0, 1, 1], [], []>} : vector<64x256xbf16>, vector<256x768xbf16>, vector<64x768xf32> -> vector<64x768xf32>
    %c0_103 = arith.constant 0 : index
    %c0_104 = arith.constant 0 : index
    %140 = vector.load %arg9[%c0_103, %c0_104] : memref<64x1024xf32, #tpu.memory_space<vmem>>, vector<64x768xf32>
    tpu.vector_store %arg9[%c0_103, %c0_104], %139 {strides = array<i32>} : memref<64x1024xf32, #tpu.memory_space<vmem>>, vector<64x768xf32>,
    %c0_105 = arith.constant 0 : index
    %c256_106 = arith.constant 256 : index
    %141 = vector.load %arg9[%c0_105, %c256_106] : memref<64x1024xf32, #tpu.memory_space<vmem>>, vector<64x256xf32>
    %c0_107 = arith.constant 0 : index
    %c0_108 = arith.constant 0 : index
    %142 = vector.load %arg7[%c0_107, %c0_108] : memref<1x512xf32, #tpu.memory_space<vmem>>, vector<1x256xf32>
    %143 = vector.broadcast %142 : vector<1x256xf32> to vector<64x256xf32>
    %144 = arith.addf %141, %143 : vector<64x256xf32>
    %145 = arith.negf %144 : vector<64x256xf32>
    %146 = math.exp %145 : vector<64x256xf32>
    %cst_109 = arith.constant 1.000000e+00 : f32
    %147 = vector.broadcast %cst_109 : f32 to vector<64x256xf32>
    %148 = arith.addf %147, %146 : vector<64x256xf32>
    %149 = arith.divf %147, %148 : vector<64x256xf32>
    %c0_110 = arith.constant 0 : index
    %c256_111 = arith.constant 256 : index
    %150 = vector.load %arg9[%c0_110, %c256_111] : memref<64x1024xf32, #tpu.memory_space<vmem>>, vector<64x256xf32>
    tpu.vector_store %arg9[%c0_110, %c256_111], %149 {strides = array<i32>} : memref<64x1024xf32, #tpu.memory_space<vmem>>, vector<64x256xf32>,
    %c0_112 = arith.constant 0 : index
    %c512_113 = arith.constant 512 : index
    %151 = vector.load %arg9[%c0_112, %c512_113] : memref<64x1024xf32, #tpu.memory_space<vmem>>, vector<64x256xf32>
    %c0_114 = arith.constant 0 : index
    %c256_115 = arith.constant 256 : index
    %152 = vector.load %arg7[%c0_114, %c256_115] : memref<1x512xf32, #tpu.memory_space<vmem>>, vector<1x256xf32>
    %153 = vector.broadcast %152 : vector<1x256xf32> to vector<64x256xf32>
    %154 = arith.addf %151, %153 : vector<64x256xf32>
    %155 = arith.negf %154 : vector<64x256xf32>
    %156 = math.exp %155 : vector<64x256xf32>
    %cst_116 = arith.constant 1.000000e+00 : f32
    %157 = vector.broadcast %cst_116 : f32 to vector<64x256xf32>
    %158 = arith.addf %157, %156 : vector<64x256xf32>
    %159 = arith.divf %157, %158 : vector<64x256xf32>
    %c0_117 = arith.constant 0 : index
    %c512_118 = arith.constant 512 : index
    %160 = vector.load %arg9[%c0_117, %c512_118] : memref<64x1024xf32, #tpu.memory_space<vmem>>, vector<64x256xf32>
    tpu.vector_store %arg9[%c0_117, %c512_118], %159 {strides = array<i32>} : memref<64x1024xf32, #tpu.memory_space<vmem>>, vector<64x256xf32>,
    %cst_119 = arith.constant 0.000000e+00 : f32
    %161 = vector.broadcast %cst_119 : f32 to vector<8x256xf32>
    %c0_120 = arith.constant 0 : index
    %c0_121 = arith.constant 0 : index
    %162 = vector.load %arg9[%c0_120, %c0_121] : memref<64x1024xf32, #tpu.memory_space<vmem>>, vector<8x256xf32>
    %c0_122 = arith.constant 0 : index
    %c256_123 = arith.constant 256 : index
    %163 = vector.load %arg9[%c0_122, %c256_123] : memref<64x1024xf32, #tpu.memory_space<vmem>>, vector<8x256xf32>
    %c0_124 = arith.constant 0 : index
    %c512_125 = arith.constant 512 : index
    %164 = vector.load %arg9[%c0_124, %c512_125] : memref<64x1024xf32, #tpu.memory_space<vmem>>, vector<8x256xf32>
    %c0_126 = arith.constant 0 : index
    %c0_127 = arith.constant 0 : index
    %165 = vector.load %arg10[%c0_126, %c0_127] : memref<64x256xf32, #tpu.memory_space<vmem>>, vector<8x256xf32>
    %166 = arith.subf %161, %162 : vector<8x256xf32>
    %167 = arith.mulf %166, %163 : vector<8x256xf32>
    %168 = arith.addf %167, %162 : vector<8x256xf32>
    %169 = math.tanh %168 : vector<8x256xf32>
    %170 = arith.subf %169, %165 : vector<8x256xf32>
    %171 = arith.mulf %170, %164 : vector<8x256xf32>
    %172 = arith.addf %171, %165 : vector<8x256xf32>
    %c0_i32 = arith.constant 0 : i32
    %173 = vector.broadcast %c0_i32 : i32 to vector<8x1xi32>
    %174 = arith.cmpi eq, %5, %173 : vector<8x1xi32>
    %175 = vector.shape_cast %174 : vector<8x1xi1> to vector<8x1xi1>
    %176 = vector.broadcast %175 : vector<8x1xi1> to vector<8x256xi1>
    %177 = arith.select %176, %172, %15 : vector<8x256xi1>, vector<8x256xf32>
    %c8_128 = arith.constant 8 : index
    %c0_129 = arith.constant 0 : index
    %178 = vector.load %arg9[%c8_128, %c0_129] : memref<64x1024xf32, #tpu.memory_space<vmem>>, vector<8x256xf32>
    %c8_130 = arith.constant 8 : index
    %c256_131 = arith.constant 256 : index
    %179 = vector.load %arg9[%c8_130, %c256_131] : memref<64x1024xf32, #tpu.memory_space<vmem>>, vector<8x256xf32>
    %c8_132 = arith.constant 8 : index
    %c512_133 = arith.constant 512 : index
    %180 = vector.load %arg9[%c8_132, %c512_133] : memref<64x1024xf32, #tpu.memory_space<vmem>>, vector<8x256xf32>
    %c8_134 = arith.constant 8 : index
    %c0_135 = arith.constant 0 : index
    %181 = vector.load %arg10[%c8_134, %c0_135] : memref<64x256xf32, #tpu.memory_space<vmem>>, vector<8x256xf32>
    %182 = arith.subf %168, %178 : vector<8x256xf32>
    %183 = arith.mulf %182, %179 : vector<8x256xf32>
    %184 = arith.addf %183, %178 : vector<8x256xf32>
    %185 = math.tanh %184 : vector<8x256xf32>
    %186 = arith.subf %185, %181 : vector<8x256xf32>
    %187 = arith.mulf %186, %180 : vector<8x256xf32>
    %188 = arith.addf %187, %181 : vector<8x256xf32>
    %c1_i32_136 = arith.constant 1 : i32
    %189 = vector.broadcast %c1_i32_136 : i32 to vector<8x1xi32>
    %190 = arith.cmpi eq, %5, %189 : vector<8x1xi32>
    %191 = vector.shape_cast %190 : vector<8x1xi1> to vector<8x1xi1>
    %192 = vector.broadcast %191 : vector<8x1xi1> to vector<8x256xi1>
    %193 = arith.select %192, %188, %177 : vector<8x256xi1>, vector<8x256xf32>
    %c16_137 = arith.constant 16 : index
    %c0_138 = arith.constant 0 : index
    %194 = vector.load %arg9[%c16_137, %c0_138] : memref<64x1024xf32, #tpu.memory_space<vmem>>, vector<8x256xf32>
    %c16_139 = arith.constant 16 : index
    %c256_140 = arith.constant 256 : index
    %195 = vector.load %arg9[%c16_139, %c256_140] : memref<64x1024xf32, #tpu.memory_space<vmem>>, vector<8x256xf32>
    %c16_141 = arith.constant 16 : index
    %c512_142 = arith.constant 512 : index
    %196 = vector.load %arg9[%c16_141, %c512_142] : memref<64x1024xf32, #tpu.memory_space<vmem>>, vector<8x256xf32>
    %c16_143 = arith.constant 16 : index
    %c0_144 = arith.constant 0 : index
    %197 = vector.load %arg10[%c16_143, %c0_144] : memref<64x256xf32, #tpu.memory_space<vmem>>, vector<8x256xf32>
    %198 = arith.subf %184, %194 : vector<8x256xf32>
    %199 = arith.mulf %198, %195 : vector<8x256xf32>
    %200 = arith.addf %199, %194 : vector<8x256xf32>
    %201 = math.tanh %200 : vector<8x256xf32>
    %202 = arith.subf %201, %197 : vector<8x256xf32>
    %203 = arith.mulf %202, %196 : vector<8x256xf32>
    %204 = arith.addf %203, %197 : vector<8x256xf32>
    %c2_i32 = arith.constant 2 : i32
    %205 = vector.broadcast %c2_i32 : i32 to vector<8x1xi32>
    %206 = arith.cmpi eq, %5, %205 : vector<8x1xi32>
    %207 = vector.shape_cast %206 : vector<8x1xi1> to vector<8x1xi1>
    %208 = vector.broadcast %207 : vector<8x1xi1> to vector<8x256xi1>
    %209 = arith.select %208, %204, %193 : vector<8x256xi1>, vector<8x256xf32>
    %c24_145 = arith.constant 24 : index
    %c0_146 = arith.constant 0 : index
    %210 = vector.load %arg9[%c24_145, %c0_146] : memref<64x1024xf32, #tpu.memory_space<vmem>>, vector<8x256xf32>
    %c24_147 = arith.constant 24 : index
    %c256_148 = arith.constant 256 : index
    %211 = vector.load %arg9[%c24_147, %c256_148] : memref<64x1024xf32, #tpu.memory_space<vmem>>, vector<8x256xf32>
    %c24_149 = arith.constant 24 : index
    %c512_150 = arith.constant 512 : index
    %212 = vector.load %arg9[%c24_149, %c512_150] : memref<64x1024xf32, #tpu.memory_space<vmem>>, vector<8x256xf32>
    %c24_151 = arith.constant 24 : index
    %c0_152 = arith.constant 0 : index
    %213 = vector.load %arg10[%c24_151, %c0_152] : memref<64x256xf32, #tpu.memory_space<vmem>>, vector<8x256xf32>
    %214 = arith.subf %200, %210 : vector<8x256xf32>
    %215 = arith.mulf %214, %211 : vector<8x256xf32>
    %216 = arith.addf %215, %210 : vector<8x256xf32>
    %217 = math.tanh %216 : vector<8x256xf32>
    %218 = arith.subf %217, %213 : vector<8x256xf32>
    %219 = arith.mulf %218, %212 : vector<8x256xf32>
    %220 = arith.addf %219, %213 : vector<8x256xf32>
    %c3_i32 = arith.constant 3 : i32
    %221 = vector.broadcast %c3_i32 : i32 to vector<8x1xi32>
    %222 = arith.cmpi eq, %5, %221 : vector<8x1xi32>
    %223 = vector.shape_cast %222 : vector<8x1xi1> to vector<8x1xi1>
    %224 = vector.broadcast %223 : vector<8x1xi1> to vector<8x256xi1>
    %225 = arith.select %224, %220, %209 : vector<8x256xi1>, vector<8x256xf32>
    %c32_153 = arith.constant 32 : index
    %c0_154 = arith.constant 0 : index
    %226 = vector.load %arg9[%c32_153, %c0_154] : memref<64x1024xf32, #tpu.memory_space<vmem>>, vector<8x256xf32>
    %c32_155 = arith.constant 32 : index
    %c256_156 = arith.constant 256 : index
    %227 = vector.load %arg9[%c32_155, %c256_156] : memref<64x1024xf32, #tpu.memory_space<vmem>>, vector<8x256xf32>
    %c32_157 = arith.constant 32 : index
    %c512_158 = arith.constant 512 : index
    %228 = vector.load %arg9[%c32_157, %c512_158] : memref<64x1024xf32, #tpu.memory_space<vmem>>, vector<8x256xf32>
    %c32_159 = arith.constant 32 : index
    %c0_160 = arith.constant 0 : index
    %229 = vector.load %arg10[%c32_159, %c0_160] : memref<64x256xf32, #tpu.memory_space<vmem>>, vector<8x256xf32>
    %230 = arith.subf %216, %226 : vector<8x256xf32>
    %231 = arith.mulf %230, %227 : vector<8x256xf32>
    %232 = arith.addf %231, %226 : vector<8x256xf32>
    %233 = math.tanh %232 : vector<8x256xf32>
    %234 = arith.subf %233, %229 : vector<8x256xf32>
    %235 = arith.mulf %234, %228 : vector<8x256xf32>
    %236 = arith.addf %235, %229 : vector<8x256xf32>
    %c4_i32 = arith.constant 4 : i32
    %237 = vector.broadcast %c4_i32 : i32 to vector<8x1xi32>
    %238 = arith.cmpi eq, %5, %237 : vector<8x1xi32>
    %239 = vector.shape_cast %238 : vector<8x1xi1> to vector<8x1xi1>
    %240 = vector.broadcast %239 : vector<8x1xi1> to vector<8x256xi1>
    %241 = arith.select %240, %236, %225 : vector<8x256xi1>, vector<8x256xf32>
    %c40_161 = arith.constant 40 : index
    %c0_162 = arith.constant 0 : index
    %242 = vector.load %arg9[%c40_161, %c0_162] : memref<64x1024xf32, #tpu.memory_space<vmem>>, vector<8x256xf32>
    %c40_163 = arith.constant 40 : index
    %c256_164 = arith.constant 256 : index
    %243 = vector.load %arg9[%c40_163, %c256_164] : memref<64x1024xf32, #tpu.memory_space<vmem>>, vector<8x256xf32>
    %c40_165 = arith.constant 40 : index
    %c512_166 = arith.constant 512 : index
    %244 = vector.load %arg9[%c40_165, %c512_166] : memref<64x1024xf32, #tpu.memory_space<vmem>>, vector<8x256xf32>
    %c40_167 = arith.constant 40 : index
    %c0_168 = arith.constant 0 : index
    %245 = vector.load %arg10[%c40_167, %c0_168] : memref<64x256xf32, #tpu.memory_space<vmem>>, vector<8x256xf32>
    %246 = arith.subf %232, %242 : vector<8x256xf32>
    %247 = arith.mulf %246, %243 : vector<8x256xf32>
    %248 = arith.addf %247, %242 : vector<8x256xf32>
    %249 = math.tanh %248 : vector<8x256xf32>
    %250 = arith.subf %249, %245 : vector<8x256xf32>
    %251 = arith.mulf %250, %244 : vector<8x256xf32>
    %252 = arith.addf %251, %245 : vector<8x256xf32>
    %c5_i32 = arith.constant 5 : i32
    %253 = vector.broadcast %c5_i32 : i32 to vector<8x1xi32>
    %254 = arith.cmpi eq, %5, %253 : vector<8x1xi32>
    %255 = vector.shape_cast %254 : vector<8x1xi1> to vector<8x1xi1>
    %256 = vector.broadcast %255 : vector<8x1xi1> to vector<8x256xi1>
    %257 = arith.select %256, %252, %241 : vector<8x256xi1>, vector<8x256xf32>
    %c48_169 = arith.constant 48 : index
    %c0_170 = arith.constant 0 : index
    %258 = vector.load %arg9[%c48_169, %c0_170] : memref<64x1024xf32, #tpu.memory_space<vmem>>, vector<8x256xf32>
    %c48_171 = arith.constant 48 : index
    %c256_172 = arith.constant 256 : index
    %259 = vector.load %arg9[%c48_171, %c256_172] : memref<64x1024xf32, #tpu.memory_space<vmem>>, vector<8x256xf32>
    %c48_173 = arith.constant 48 : index
    %c512_174 = arith.constant 512 : index
    %260 = vector.load %arg9[%c48_173, %c512_174] : memref<64x1024xf32, #tpu.memory_space<vmem>>, vector<8x256xf32>
    %c48_175 = arith.constant 48 : index
    %c0_176 = arith.constant 0 : index
    %261 = vector.load %arg10[%c48_175, %c0_176] : memref<64x256xf32, #tpu.memory_space<vmem>>, vector<8x256xf32>
    %262 = arith.subf %248, %258 : vector<8x256xf32>
    %263 = arith.mulf %262, %259 : vector<8x256xf32>
    %264 = arith.addf %263, %258 : vector<8x256xf32>
    %265 = math.tanh %264 : vector<8x256xf32>
    %266 = arith.subf %265, %261 : vector<8x256xf32>
    %267 = arith.mulf %266, %260 : vector<8x256xf32>
    %268 = arith.addf %267, %261 : vector<8x256xf32>
    %c6_i32 = arith.constant 6 : i32
    %269 = vector.broadcast %c6_i32 : i32 to vector<8x1xi32>
    %270 = arith.cmpi eq, %5, %269 : vector<8x1xi32>
    %271 = vector.shape_cast %270 : vector<8x1xi1> to vector<8x1xi1>
    %272 = vector.broadcast %271 : vector<8x1xi1> to vector<8x256xi1>
    %273 = arith.select %272, %268, %257 : vector<8x256xi1>, vector<8x256xf32>
    %c56_177 = arith.constant 56 : index
    %c0_178 = arith.constant 0 : index
    %274 = vector.load %arg9[%c56_177, %c0_178] : memref<64x1024xf32, #tpu.memory_space<vmem>>, vector<8x256xf32>
    %c56_179 = arith.constant 56 : index
    %c256_180 = arith.constant 256 : index
    %275 = vector.load %arg9[%c56_179, %c256_180] : memref<64x1024xf32, #tpu.memory_space<vmem>>, vector<8x256xf32>
    %c56_181 = arith.constant 56 : index
    %c512_182 = arith.constant 512 : index
    %276 = vector.load %arg9[%c56_181, %c512_182] : memref<64x1024xf32, #tpu.memory_space<vmem>>, vector<8x256xf32>
    %c56_183 = arith.constant 56 : index
    %c0_184 = arith.constant 0 : index
    %277 = vector.load %arg10[%c56_183, %c0_184] : memref<64x256xf32, #tpu.memory_space<vmem>>, vector<8x256xf32>
    %278 = arith.subf %264, %274 : vector<8x256xf32>
    %279 = arith.mulf %278, %275 : vector<8x256xf32>
    %280 = arith.addf %279, %274 : vector<8x256xf32>
    %281 = math.tanh %280 : vector<8x256xf32>
    %282 = arith.subf %281, %277 : vector<8x256xf32>
    %283 = arith.mulf %282, %276 : vector<8x256xf32>
    %284 = arith.addf %283, %277 : vector<8x256xf32>
    %c7_i32 = arith.constant 7 : i32
    %285 = vector.broadcast %c7_i32 : i32 to vector<8x1xi32>
    %286 = arith.cmpi eq, %5, %285 : vector<8x1xi32>
    %287 = vector.shape_cast %286 : vector<8x1xi1> to vector<8x1xi1>
    %288 = vector.broadcast %287 : vector<8x1xi1> to vector<8x256xi1>
    %289 = arith.select %288, %284, %273 : vector<8x256xi1>, vector<8x256xf32>
    %290 = arith.mulf %289, %289 : vector<8x256xf32>
    %cst_185 = arith.constant dense<0.000000e+00> : vector<8xf32>
    %291 = vector.multi_reduction <add>, %290, %cst_185 [1] : vector<8x256xf32> to vector<8xf32>
    %292 = vector.shape_cast %291 : vector<8xf32> to vector<8x1xf32>
    %cst_186 = arith.constant 9.99999996E-13 : f32
    %293 = vector.broadcast %cst_186 : f32 to vector<8x1xf32>
    %294 = arith.addf %292, %293 : vector<8x1xf32>
    %295 = math.rsqrt %294 : vector<8x1xf32>
    %296 = vector.broadcast %295 : vector<8x1xf32> to vector<8x256xf32>
    %297 = arith.mulf %289, %296 : vector<8x256xf32>
    %c0_187 = arith.constant 0 : index
    %c0_188 = arith.constant 0 : index
    %298 = vector.load %arg8[%c0_187, %c0_188] : memref<8x256xf32, #tpu.memory_space<vmem>>, vector<8x256xf32>
    tpu.vector_store %arg8[%c0_187, %c0_188], %297 {strides = array<i32>} : memref<8x256xf32, #tpu.memory_space<vmem>>, vector<8x256xf32>,
    return
  }
  func.func @transform_0(%arg0: i32) -> (i32, i32, i32) {
    %c0_i32 = arith.constant 0 : i32
    %c0_i32_0 = arith.constant 0 : i32
    %c0_i32_1 = arith.constant 0 : i32
    return %arg0, %c0_i32, %c0_i32_0 : i32, i32, i32
  }
  func.func @transform_1(%arg0: i32) -> (i32, i32, i32) {
    %c0_i32 = arith.constant 0 : i32
    %c0_i32_0 = arith.constant 0 : i32
    %c0_i32_1 = arith.constant 0 : i32
    return %arg0, %c0_i32, %c0_i32_0 : i32, i32, i32
  }
  func.func @transform_2(%arg0: i32) -> (i32, i32) {
    %c0_i32 = arith.constant 0 : i32
    %c0_i32_0 = arith.constant 0 : i32
    %c0_i32_1 = arith.constant 0 : i32
    return %c0_i32, %c0_i32_0 : i32, i32
  }
  func.func @transform_3(%arg0: i32) -> (i32, i32) {
    %c0_i32 = arith.constant 0 : i32
    %c0_i32_0 = arith.constant 0 : i32
    %c0_i32_1 = arith.constant 0 : i32
    return %c0_i32, %c0_i32_0 : i32, i32
  }
  func.func @transform_4(%arg0: i32) -> (i32, i32) {
    %c0_i32 = arith.constant 0 : i32
    %c0_i32_0 = arith.constant 0 : i32
    %c0_i32_1 = arith.constant 0 : i32
    return %c0_i32, %c0_i32_0 : i32, i32
  }
  func.func @transform_5(%arg0: i32) -> (i32, i32) {
    %c0_i32 = arith.constant 0 : i32
    %c0_i32_0 = arith.constant 0 : i32
    %c0_i32_1 = arith.constant 0 : i32
    return %c0_i32, %c0_i32_0 : i32, i32
  }
  func.func @transform_6(%arg0: i32) -> (i32, i32) {
    %c0_i32 = arith.constant 0 : i32
    %c0_i32_0 = arith.constant 0 : i32
    %c0_i32_1 = arith.constant 0 : i32
    return %c0_i32, %c0_i32_0 : i32, i32
  }
  func.func @transform_7(%arg0: i32) -> (i32, i32) {
    %c0_i32 = arith.constant 0 : i32
    %c0_i32_0 = arith.constant 0 : i32
    return %arg0, %c0_i32 : i32, i32
  }
}

</mosaic_0001>

<bundles_post_ra>
// kernel: encoder_text_forward.1
= control target key start
LH: loop header
LB: loop body
LE: loop exit
PB: predicated region body
PF: predicated region fallthrough
CT: control target
= control target key end

     0   :  { %12 = vsyncpa [#allocation5], 0  ;;  %s5024_s0 = inlined_call_operand.vmem [shape: s32[2,64,1], index: 0, kind: input, shape index: {}]   ;;  %s5025_s1 = inlined_call_operand.vmem [shape: s32[2,8,1], index: 1, kind: input, shape index: {}]   ;;  %s5026_s2 = inlined_call_operand.vmem [shape: bf16[64,128], index: 2, kind: input, shape index: {}]   ;;  %s5027_s3 = inlined_call_operand.hbm [shape: bf16[128,1024], index: 3, kind: input, shape index: {}]   ;;  %s5028_s4 = inlined_call_operand.vmem [shape: f32[1,512], index: 4, kind: input, shape index: {}]   ;;  %s5029_s5 = inlined_call_operand.hbm [shape: bf16[256,768], index: 5, kind: input, shape index: {}]   ;;  %s5030_s6 = inlined_call_operand.vmem [shape: f32[1,512], index: 6, kind: input, shape index: {}]   ;;  %s5031_s7 = inlined_call_operand.hbm [shape: f32[16,256], index: 7, kind: output, shape index: {}]  }
   0x1   :  { %13 = vsyncpa [#allocation8], 0 }
   0x2   :  { %14 = vsyncpa [#allocation6], 0 }
   0x3   :  { %16 = vsyncpa [#allocation6 + $0x1], 0  ;;  %s4278_s24 = smov 0   ;;  %s4280_s25 = smov 0  }
   0x4   :  { %s4282_s26 = smov 0   ;;  %s4284_s27 = smov 0  }
   0x5 LB: > { %s4299_s28 = sadd.s32 4294967295, %s4227_s27   ;;  %s3285_s29 = sadd.s32 4294967294, %s4227_s27   ;;  %s4227_s27 = sphi %s4284_s27, %s5045_s27   ;;  %s4223_s26 = sphi %s4282_s26, %s5044_s26   ;;  %s4219_s25 = sphi %s4280_s25, %s5043_s25   ;;  %s4215_s24 = sphi %s4278_s24, %s5042_s24  }
   0x6   : > { %s4303_s30 = sadd.s32 1, %s4227_s27   ;;  %s186_s8 = sadd.s32 1, %s4223_s26 }
   0x7   : > { %s183_s9 = ssub.s32 %s4227_s27, %s4303_s30  ;;  %p196_p0 = scmp.ne.s32.totalorder %s4223_s26, %s4219_s25 }
   0x8   : > { %p184_p1 = scmp.eq.s32.totalorder %s183_s9, 0  ;;  %p197_p2 = scmp.eq.s32.totalorder %s4299_s28, 1 }
   0x9   : > { %p202_p3 = scmp.ne.s32.totalorder %s4219_s25, %s4215_s24  ;;  %p203_p4 = scmp.eq.s32.totalorder %s3285_s29, 1 }
   0xa   : > { %s4314_s10 = scalar_select %p184_p1, %s4223_s26, %s186_s8  }
   0xb   : > { %p4316_p5 = por %p197_p2, %p196_p0  ;;  %p4320_p6 = por %p203_p4, %p202_p3 }
   0xc   : > { %p3286_p7 = scmp.ge.s32.totalorder %s4227_s27, 1  ;;  %p210_p8 = scmp.lt.s32.totalorder %s4227_s27, 3 }
   0xd   : > { %s5034_s12 = scalar_select %p4320_p6, 1, 0 }
   0xe   : > { %p5032_p9 = scmp.eq.s32.totalorder %s4299_s28, 0  ;;  %p4327_p10 = pnand %p3286_p7, %p210_p8 }
   0xf   : > { %s4229_s14 = smov [#allocation4]   ;;  %s4230_s17 = smov [#allocation7]  }
  0x10   : > { %s225_s15 = sshll.u32 %s4229_s14, 4  ;;  %p3579_p11 = pneg %p4327_p10  ;;  %s226_s15 = int_to_ptr.vmem [resolvable:$true] %s225_s15 }
  0x11   : > { %s241_s18 = sshll.u32 %s4230_s17, 4  ;;  %s4118_s19 = scalar_lea.vmem %s226_s15, 8192  ;;  %s242_s18 = int_to_ptr.vmem [resolvable:$true] %s241_s18 }
  0x12   : > { %p4335_p12 = pnand %p5032_p9, %p3579_p11  ;;  %p4119_p0 = scmp.ne.s32.totalorder %s226_s15, %s4118_s19 }
  0x13   : > { %p4126_p3 = scmp.lt.s32.totalorder %s226_s15, %s226_s15  ;;  %p4127_p4 = scmp.lt.s32.totalorder %s4118_s19, %s4118_s19 }
  0x14   : > { %p4109_p13 = pneg %p4335_p12 }
  0x15   : > { %p4128_p7 = por %p4127_p4, %p4126_p3 }
  0x16   : > { %p4121_p1 = pnand %p4119_p0, %p4109_p13 }
  0x18   : > { %p4122_p2 = pneg %p4121_p1 }
  0x1a   : > { %p4129_p8 = pnand %p4128_p7, %p4122_p2 }
  0x1c   : > { %4132 = shalt.err (!%p4129_p8)
}
  0x1d   : > { %s4231_s20 = smov 512   ;;  %s4232_s21 = smov 32  }
  0x1e   : > { %3582 = dma.hbm_to_vmem [thread:$0]  (!%p4335_p12), %s5027_s3, 8192, %s226_s15, [#allocation5], %s4231_s20, %s4231_s20, %s4232_s21  }
  0x1f   : > { %s4144_s29 = scalar_lea.vmem %s242_s18, 12288  ;;  %p4152_p9 = scmp.lt.s32.totalorder %s242_s18, %s242_s18 }
  0x20   : > { %p4145_p11 = scmp.ne.s32.totalorder %s242_s18, %s4144_s29  ;;  %p4153_p6 = scmp.lt.s32.totalorder %s4144_s29, %s4144_s29 }
  0x22   : > { %p4147_p0 = pnand %p4145_p11, %p4109_p13  ;;  %p4154_p3 = por %p4153_p6, %p4152_p9 }
  0x24   : > { %p4148_p1 = pneg %p4147_p0 }
  0x26   : > { %p4155_p2 = pnand %p4154_p3, %p4148_p1 }
  0x28   : > { %4158 = shalt.err (!%p4155_p2)
}
  0x29   : > { %s4233_s8 = smov 384   ;;  %s4234_s9 = smov 24  }
  0x2a   : > { %3585 = dma.hbm_to_vmem [thread:$0]  (!%p4335_p12), %s5029_s5, 12288, %s242_s18, [#allocation8], %s4233_s8, %s4233_s8, %s4234_s9  }
  0x2b   : > { %275 = sbr.rel (%p4327_p10) target bundleno = 1188 (0x4a4), region = 48  ;;  %p5037_p4 = scmp.eq.s32.totalorder (!%p4327_p10), %s4299_s28, 0 }
  0x30   : > { %4202 = dma.done.wait (%p5037_p4), [#allocation5], 8192   ;;  %p5038_p13 = pmov %p5037_p4 }
  0x31   : > { %p5039_p6 = pmov %p5037_p4 }
  0x32   : > { %4204 = vsyncadd (%p5038_p13), [#allocation5], 4294959104 }
  0x33   : > { %4206 = dma.done.wait (%p5039_p6), [#allocation8], 12288   ;;  %p5040_p9 = pmov %p5037_p4 }
  0x34   : > { %p315_p7 = scmp.lt.s32.totalorder %s4299_s28, 1  ;;  %v4235_v0 = vmov 0   ;;  %v3637_v7 = vld [vmem:[%s5026_s2 + $0x18] sm:$0xff]   ;;  %v3638_v10 = vld [vmem:[%s5026_s2 + $0x10] sm:$0xff]   ;;  %v3639_v13 = vld [vmem:[%s5026_s2 + $0x8] sm:$0xff]   ;;  %v335_v51 = vlaneseq  ;;  %vm421_vm12 = vcmask 523264  }
  0x35   : > { %4208 = vsyncadd (%p5040_p9), [#allocation8], 4294955008  ;;  %3636 = vset.pattern.permute.xlu1 %v4235_v0  ;;  %3635 = vset.pattern.permute.xlu0 %v4235_v0  ;;  %v3640_v14 = vld [vmem:[%s5026_s2] sm:$0xff]   ;;  %v561_v23 = vld [vmem:[#allocation4 + $0x1d0] sm:$0xff]  ;;  %v4236_v59 = vmov 0.0   ;;  %s312_s9 = sand.u32 1, %s4219_s25  }
  0x36   : > { %s316_s13 = scalar_select %p315_p7, %s4299_s28, 1  ;;  %1065 = vmatprep.mubr.bf16.mxu1 %v4235_v0  ;;  %3553 = vmatprep.subr.bf16.mxu0 %v3637_v7  ;;  %v4396_v21 = vld [vmem:[#allocation4 + $0x1c0] sm:$0xff]  ;;  %v565_v28 = vld [vmem:[#allocation4 + $0x1f0] sm:$0xff]  ;;  %v336_v52 = vand.u32 127, %v335_v51 }
  0x37   : > { %3554 = vmatpush3.bf16.msra.mxu0 %v3637_v7  ;;  %v4398_v22 = vld [vmem:[#allocation4 + $0x1e0] sm:$0xff]  ;;  %v3375_v29 = vcombine.high %v561_v23, %v565_v28  ;;  %v3374_v30 = vcombine.low %v561_v23, %v565_v28  ;;  %v553_v31 = vld [vmem:[#allocation4 + $0x190] sm:$0xff]  ;;  %s3293_s14 = sshll.u32 %s312_s9, 4  ;;  %s3544_s17 = sshll.u32 %s4299_s28, 8 }
  0x38   : > { %s3543_s15 = sshll.u32 %s316_s13, 6  ;;  %s3296_s16 = sshll.u32 %s316_s13, 3  ;;  %3555 = vmatprep.subr.bf16.mxu0 %v3638_v10  ;;  %v3370_v26 = vcombine.low %v4396_v21, %v4398_v22  ;;  %v3371_v27 = vcombine.high %v4396_v21, %v4398_v22  ;;  %v557_v32 = vld [vmem:[#allocation4 + $0x1b0] sm:$0xff]  ;;  %v551_v57 = vld [vmem:[#allocation4 + $0x180] sm:$0xff] }
  0x39   : > { %s319_s20 = scalar_lea.vmem %s5024_s0, %s3543_s15  ;;  %s323_s23 = scalar_lea.vmem %s5025_s1, %s3296_s16  ;;  %v3367_v33 = vcombine.high %v553_v31, %v557_v32  ;;  %v545_v34 = vld [vmem:[#allocation4 + $0x150] sm:$0xff]  ;;  %1033 = vmatprep.subr.bf16.mxu1 %v3375_v29  ;;  %v3366_v36 = vcombine.low %v553_v31, %v557_v32  ;;  %v555_v58 = vld [vmem:[#allocation4 + $0x1a0] sm:$0xff] }
  0x3a   : > { %v327_v1 = vld [vmem:[%s319_s20 + $0x10] sm:$0xff]  ;;  %v325_v2 = vld [vmem:[%s319_s20] sm:$0xff]  ;;  %v328_v3 = vld [vmem:[%s319_s20 + $0x18] sm:$0xff]  ;;  %1034 = vmatpush1.bf16.msra.mxu1 %v3374_v30  ;;  %s314_s13 = scalar_lea.vmem [#allocation9], %s3293_s14  ;;  %s4989_s19 = scalar_lea.hbm %s5031_s7, %s3544_s17 }
  0x3b   : > { %344 = vperm.xlu1 %3636, %v327_v1   ;;  %338 = vperm.xlu0 %3635, %v325_v2   ;;  %v326_v4 = vld [vmem:[%s319_s20 + $0x8] sm:$0xff]  ;;  %v333_v5 = vld [vmem:[%s323_s23] sm:$0xff]  ;;  %v332_v11 = vld [vmem:[%s319_s20 + $0x38] sm:$0xff]  ;;  %s3192_s15 = sshll.u32 %s314_s13, 4  ;;  %s4237_s28 = smov [#allocation9]   ;;  %s3193_s15 = int_to_ptr.vmem [resolvable:$true] %s3192_s15 }
  0x3c   : > { %v330_v6 = vld [vmem:[%s319_s20 + $0x28] sm:$0xff]  ;;  %v3297_v8 = vadd.s32 4294967295, %v333_v5  ;;  %v329_v9 = vld [vmem:[%s319_s20 + $0x20] sm:$0xff]  ;;  %v331_v12 = vld [vmem:[%s319_s20 + $0x30] sm:$0xff]  ;;  %3556 = vmatpush3.bf16.msra.mxu0 %v3638_v10  ;;  %1035 = vmatprep.subr.bf16.mxu1 %v3367_v33  ;;  %v3363_v5 = vcombine.high %v551_v57, %v555_v58  ;;  %s3178_s20 = scalar_lea.sflag [#allocation6], %s312_s9  ;;  %s4159_s21 = scalar_lea.vmem %s3193_s15, 256 }
  0x3d   : > { %3557 = vmatprep.subr.bf16.mxu0 %v3639_v13  ;;  %v549_v35 = vld [vmem:[#allocation4 + $0x170] sm:$0xff]  ;;  %v547_v7 = vld [vmem:[#allocation4 + $0x160] sm:$0xff]  ;;  %p4160_p10 = scmp.ne.s32.totalorder %s3193_s15, %s4159_s21  ;;  %s4163_s22 = sshll.u32 %s4237_s28, 4  ;;  %s4164_s22 = int_to_ptr.vmem [resolvable:$false] %s4163_s22 }
  0x3e   : > { %vm2978_vm0 = vcmp.eq.s32.totalorder %v3297_v8, 1  ;;  %vm2948_vm1 = vcmp.eq.s32.totalorder %v3297_v8, 0  ;;  %vm3038_vm2 = vcmp.eq.s32.totalorder %v3297_v8, 3  ;;  %vm3008_vm3 = vcmp.eq.s32.totalorder %v3297_v8, 2  ;;  %v537_v38 = vld [vmem:[#allocation4 + $0x110] sm:$0xff]  ;;  %1036 = vmatpush1.bf16.msra.mxu1 %v3366_v36  ;;  %v527_v21 = vld [vmem:[#allocation4 + $0xc0] sm:$0xff]  ;;  %p4166_p11 = scmp.lt.s32.totalorder %s3193_s15, %s4164_s22 }
  0x3f   : > { %347 = vperm.xlu1 %3636, %v328_v3   ;;  %341 = vperm.xlu0 %3635, %v326_v4   ;;  %v2979_v15 = vsel %vm2978_vm0, 1, %v4235_v0  ;;  %v2949_v16 = vsel %vm2948_vm1, 1, %v4235_v0  ;;  %v3039_v17 = vsel %vm3038_vm2, 1, %v4235_v0  ;;  %v3009_v18 = vsel %vm3008_vm3, 1, %v4235_v0  ;;  %v541_v39 = vld [vmem:[#allocation4 + $0x130] sm:$0xff]  ;;  %v531_v22 = vld [vmem:[#allocation4 + $0xe0] sm:$0xff]  ;;  %p4161_p12 = pnand %p4160_p10, %p4316_p5 }
  0x40   : > { %3558 = vmatpush3.bf16.msra.mxu0 %v3639_v13  ;;  %vm3098_vm4 = vcmp.eq.s32.totalorder %v3297_v8, 5  ;;  %vm3068_vm5 = vcmp.eq.s32.totalorder %v3297_v8, 4  ;;  %vm3158_vm6 = vcmp.eq.s32.totalorder %v3297_v8, 7  ;;  %vm3128_vm7 = vcmp.eq.s32.totalorder %v3297_v8, 6  ;;  %v529_v41 = vld [vmem:[#allocation4 + $0xd0] sm:$0xff]  ;;  %v511_v31 = vld [vmem:[#allocation4 + $0x40] sm:$0xff] }
  0x41   : > { %3559 = vmatprep.subr.bf16.mxu0 %v3640_v14  ;;  %v3099_v19 = vsel %vm3098_vm4, 1, %v4235_v0  ;;  %v3069_v20 = vsel %vm3068_vm5, 1, %v4235_v0  ;;  %v3159_v24 = vsel %vm3158_vm6, 1, %v4235_v0  ;;  %v3129_v25 = vsel %vm3128_vm7, 1, %v4235_v0  ;;  %v533_v42 = vld [vmem:[#allocation4 + $0xf0] sm:$0xff]  ;;  %v515_v32 = vld [vmem:[#allocation4 + $0x60] sm:$0xff]  ;;  %p4162_p8 = pneg %p4161_p12 }
  0x42   : > { %v3359_v37 = vcombine.high %v545_v34, %v549_v35  ;;  %v3358_v40 = vcombine.low %v545_v34, %v549_v35  ;;  %v3351_v43 = vcombine.high %v537_v38, %v541_v39  ;;  %v3350_v44 = vcombine.low %v537_v38, %v541_v39  ;;  %v521_v45 = vld [vmem:[#allocation4 + $0x90] sm:$0xff]  ;;  %v503_v39 = vld [vmem:[#allocation4] sm:$0xff]  ;;  %s4165_s23 = scalar_lea.vmem %s4164_s22, 512 }
  0x43   : > { %353 = vperm.xlu1 %3636, %v330_v6   ;;  %350 = vperm.xlu0 %3635, %v329_v9   ;;  %v525_v46 = vld [vmem:[#allocation4 + $0xb0] sm:$0xff]  ;;  %v3343_v47 = vcombine.high %v529_v41, %v533_v42  ;;  %v3342_v48 = vcombine.low %v529_v41, %v533_v42  ;;  %v543_v6 = vld [vmem:[#allocation4 + $0x140] sm:$0xff]  ;;  %v3338_v28 = vcombine.low %v527_v21, %v531_v22  ;;  %p4167_p0 = scmp.lt.s32.totalorder %s4165_s23, %s4159_s21 }
  0x44   : > { %3560 = vmatpush3.bf16.msra.mxu0 %v3640_v14  ;;  %1037 = vmatprep.subr.bf16.mxu1 %v3359_v37  ;;  %v3335_v49 = vcombine.high %v521_v45, %v525_v46  ;;  %v3334_v50 = vcombine.low %v521_v45, %v525_v46  ;;  %v3355_v14 = vcombine.high %v543_v6, %v547_v7  ;;  %v513_v33 = vld [vmem:[#allocation4 + $0x50] sm:$0xff] }
  0x45   : > { %887 = vmatprep.subr.bf16.mxu0 %v3371_v27  ;;  %1038 = vmatpush1.bf16.msra.mxu1 %v3358_v40  ;;  %v523_v27 = vld [vmem:[#allocation4 + $0xa0] sm:$0xff]  ;;  %v3323_v34 = vcombine.high %v511_v31, %v515_v32  ;;  %v517_v35 = vld [vmem:[#allocation4 + $0x70] sm:$0xff]  ;;  %v3322_v36 = vcombine.low %v511_v31, %v515_v32  ;;  %v554_v32 = vld [vmem:[#allocation4 + $0x198] sm:$0xff]  ;;  %p4168_p1 = por %p4167_p0, %p4166_p11 }
  0x46   : > { %1039 = vmatprep.subr.bf16.mxu1 %v3351_v43  ;;  %v3327_v37 = vcombine.high %v513_v33, %v517_v35  ;;  %v3326_v38 = vcombine.low %v513_v33, %v517_v35  ;;  %v507_v40 = vld [vmem:[#allocation4 + $0x20] sm:$0xff]  ;;  %v505_v41 = vld [vmem:[#allocation4 + $0x10] sm:$0xff]  ;;  %v558_v33 = vld [vmem:[#allocation4 + $0x1b8] sm:$0xff] }
  0x47   : > { %359 = vperm.xlu1 %3636, %v332_v11   ;;  %356 = vperm.xlu0 %3635, %v331_v12   ;;  %v3362_v11 = vcombine.low %v551_v57, %v555_v58  ;;  %v3315_v42 = vcombine.high %v503_v39, %v507_v40  ;;  %v509_v43 = vld [vmem:[#allocation4 + $0x30] sm:$0xff]  ;;  %v3369_v35 = vcombine.high %v554_v32, %v558_v33  ;;  %p4169_p3 = pnand %p4168_p1, %p4162_p8 }
  0x48   : > { %v3319_v45 = vcombine.high %v505_v41, %v509_v43  ;;  %v3318_v46 = vcombine.low %v505_v41, %v509_v43  ;;  %v542_v41 = vld [vmem:[#allocation4 + $0x138] sm:$0xff] }
  0x49   : > { %1040 = vmatpush1.bf16.msra.mxu1 %v3350_v44  ;;  %v3314_v44 = vcombine.low %v503_v39, %v507_v40  ;;  %v538_v40 = vld [vmem:[#allocation4 + $0x118] sm:$0xff] }
  0x4a   : > { %1041 = vmatprep.subr.bf16.mxu1 %v3343_v47  ;;  %v560_v47 = vld [vmem:[#allocation4 + $0x1c8] sm:$0xff]  ;;  %v3353_v43 = vcombine.high %v538_v40, %v542_v41 }
  0x4b   : > { %2981 = vperm.xlu1 %3636, %v2979_v15   ;;  %2951 = vperm.xlu0 %3635, %v2949_v16   ;;  %v535_v15 = vld [vmem:[#allocation4 + $0x100] sm:$0xff] }
  0x4c   : > { %v539_v16 = vld [vmem:[#allocation4 + $0x120] sm:$0xff] }
  0x4d   : > { %1042 = vmatpush1.bf16.msra.mxu1 %v3342_v48  ;;  %v3347_v23 = vcombine.high %v535_v15, %v539_v16  ;;  %v564_v48 = vld [vmem:[#allocation4 + $0x1e8] sm:$0xff] }
  0x4e   : > { %1043 = vmatprep.subr.bf16.mxu1 %v3335_v49  ;;  %v3373_v49 = vcombine.high %v560_v47, %v564_v48 }
  0x4f   : > { %3041 = vperm.xlu1 %3636, %v3039_v17   ;;  %3011 = vperm.xlu0 %3635, %v3009_v18  }
  0x51   : > { %1044 = vmatpush1.bf16.msra.mxu1 %v3334_v50  ;;  %v3372_v50 = vcombine.low %v560_v47, %v564_v48  ;;  %v522_v48 = vld [vmem:[#allocation4 + $0x98] sm:$0xff] }
  0x52   : > { %1045 = vmatprep.subr.bf16.mxu1 %v3327_v37  ;;  %v550_v37 = vld [vmem:[#allocation4 + $0x178] sm:$0xff] }
  0x53   : > { %3101 = vperm.xlu1 %3636, %v3099_v19   ;;  %3071 = vperm.xlu0 %3635, %v3069_v20   ;;  %v3354_v20 = vcombine.low %v543_v6, %v547_v7 }
  0x55   : > { %1046 = vmatpush1.bf16.msra.mxu1 %v3326_v38  ;;  %v3368_v38 = vcombine.low %v554_v32, %v558_v33  ;;  %v3694_v32 = vld [vmem:[#allocation7 + $0x2dc] ss:$24 sps:$4 sm:$0xff]   ;;  %v3692_v33 = vld [vmem:[#allocation7 + $0x2d8] ss:$24 sps:$4 sm:$0xff]  }
  0x56   : > { %1047 = vmatprep.subr.bf16.mxu1 %v3319_v45  ;;  %v534_v45 = vld [vmem:[#allocation4 + $0xf8] sm:$0xff] }
  0x57   : > { %3161 = vperm.xlu1 %3636, %v3159_v24   ;;  %3131 = vperm.xlu0 %3635, %v3129_v25   ;;  %v3346_v24 = vcombine.low %v535_v15, %v539_v16  ;;  %v3339_v25 = vcombine.high %v527_v21, %v531_v22  ;;  %v524_v15 = vld [vmem:[#allocation4 + $0xa8] sm:$0xff] }
  0x58   : > { %v504_v22 = vld [vmem:[#allocation4 + $0x8] sm:$0xff] }
  0x59   : > { %1048 = vmatpush1.bf16.msra.mxu1 %v3318_v46  ;;  %v3352_v46 = vcombine.low %v538_v40, %v542_v41  ;;  %v3706_v40 = vld [vmem:[#allocation7 + $0x27c] ss:$24 sps:$4 sm:$0xff]   ;;  %v3704_v41 = vld [vmem:[#allocation7 + $0x278] ss:$24 sps:$4 sm:$0xff]  }
  0xb6   : > { %v345_v53 = vpop.permute.xlu1 %344  ;;  %v339_v54 = vpop.permute.xlu0 %338 }
  0xb7   : > { %vm363_vm8 = vcmp.eq.s32.totalorder %v336_v52, %v345_v53  ;;  %vm361_vm9 = vcmp.eq.s32.totalorder %v336_v52, %v339_v54 }
  0xb8   : > { %v3300_v60 = vsel %vm363_vm8, 1.0, %v4236_v59  ;;  %v3298_v61 = vsel %vm361_vm9, 1.0, %v4236_v59 }
  0xba   : > { %v348_v55 = vpop.permute.xlu1 %347  ;;  %v342_v56 = vpop.permute.xlu0 %341 }
  0xbb   : > { %vm364_vm10 = vcmp.eq.s32.totalorder %v336_v52, %v348_v55  ;;  %vm362_vm11 = vcmp.eq.s32.totalorder %v336_v52, %v342_v56  ;;  %v552_v55 = vld [vmem:[#allocation4 + $0x188] sm:$0xff] }
  0xbc   : > { %v3301_v62 = vsel %vm364_vm10, 1.0, %v4236_v59  ;;  %v3299_v63 = vsel %vm362_vm11, 1.0, %v4236_v59  ;;  %v556_v56 = vld [vmem:[#allocation4 + $0x1a8] sm:$0xff] }
  0xbd   : > { %v386_v1 = vpack.c.bf16 %v3301_v62, %v3300_v60  ;;  %v385_v2 = vpack.c.bf16 %v3299_v63, %v3298_v61  ;;  %v544_v61 = vld [vmem:[#allocation4 + $0x148] sm:$0xff]  ;;  %v3364_v63 = vcombine.low %v552_v55, %v556_v56 }
  0xbe   : > { %v354_v3 = vpop.permute.xlu1 %353  ;;  %v351_v4 = vpop.permute.xlu0 %350  ;;  %v548_v62 = vld [vmem:[#allocation4 + $0x168] sm:$0xff] }
  0xbf   : > { %vm366_vm13 = vcmp.eq.s32.totalorder %v336_v52, %v354_v3  ;;  %vm365_vm14 = vcmp.eq.s32.totalorder %v336_v52, %v351_v4  ;;  %3561 = vmatprep.mubr.msk.bf16.mxu0 %vm421_vm12, %v385_v2  ;;  %v536_v3 = vld [vmem:[#allocation4 + $0x108] sm:$0xff] }
  0xc0   : > { %v3303_v8 = vsel %vm366_vm13, 1.0, %v4236_v59  ;;  %v3302_v9 = vsel %vm365_vm14, 1.0, %v4236_v59  ;;  %3562 = vmatmul.mubr.msk.bf16.vlgmr.msra.gmra.mxu0 %vm421_vm12, %v386_v1  ;;  %v3357_v1 = vcombine.high %v544_v61, %v548_v62  ;;  %v540_v4 = vld [vmem:[#allocation4 + $0x128] sm:$0xff] }
  0xc1   : > { %v387_v10 = vpack.c.bf16 %v3303_v8, %v3302_v9  ;;  %888 = vmatpush1.bf16.msra.mxu0 %v3370_v26  ;;  %v519_v26 = vld [vmem:[#allocation4 + $0x80] sm:$0xff]  ;;  %v3349_v7 = vcombine.high %v536_v3, %v540_v4  ;;  %v528_v9 = vld [vmem:[#allocation4 + $0xc8] sm:$0xff] }
  0xc2   : > { %v360_v12 = vpop.permute.xlu1 %359  ;;  %v357_v13 = vpop.permute.xlu0 %356  ;;  %889 = vmatprep.subr.bf16.mxu0 %v3363_v5  ;;  %v3331_v29 = vcombine.high %v519_v26, %v523_v27  ;;  %v3330_v30 = vcombine.low %v519_v26, %v523_v27  ;;  %v3356_v5 = vcombine.low %v544_v61, %v548_v62 }
  0xc3   : > { %vm368_vm15 = vcmp.eq.s32.totalorder %v336_v52, %v360_v12  ;;  %vm367_vm0 = vcmp.eq.s32.totalorder %v336_v52, %v357_v13  ;;  %3565 = vmatprep.mubr.msk.bf16.mxu0 %vm421_vm12, %v387_v10  ;;  %v532_v10 = vld [vmem:[#allocation4 + $0xe8] sm:$0xff] }
  0xc4   : > { %v3305_v17 = vsel %vm368_vm15, 1.0, %v4236_v59  ;;  %v3304_v18 = vsel %vm367_vm0, 1.0, %v4236_v59  ;;  %v3365_v59 = vcombine.high %v552_v55, %v556_v56  ;;  %v3341_v12 = vcombine.high %v528_v9, %v532_v10 }
  0xc5   : > { %v388_v19 = vpack.c.bf16 %v3305_v17, %v3304_v18  ;;  %890 = vmatpush1.bf16.msra.mxu0 %v3362_v11  ;;  %v3348_v11 = vcombine.low %v536_v3, %v540_v4  ;;  %v3340_v16 = vcombine.low %v528_v9, %v532_v10  ;;  %v3644_v3 = vld [vmem:[#allocation7 + $0x158] ss:$24 sps:$4 sm:$0xff]   ;;  %v3661_v10 = vld [vmem:[#allocation7 + $0xc4] ss:$24 sps:$4 sm:$0xff]  }
  0xc6   : > { %891 = vmatprep.subr.bf16.mxu0 %v3355_v14  ;;  %v520_v14 = vld [vmem:[#allocation4 + $0x88] sm:$0xff]  ;;  %v3647_v4 = vld [vmem:[#allocation7 + $0x120] ss:$24 sps:$4 sm:$0xff]  }
  0xc7   : > { %v3333_v18 = vcombine.high %v520_v14, %v524_v15  ;;  %v3656_v9 = vld [vmem:[#allocation7 + $0xf8] ss:$24 sps:$4 sm:$0xff]  }
  0xc8   : > { %3566 = vmatmul.mubr.msk.bf16.gmra.mxu0 %vm421_vm12, %v388_v19  ;;  %v512_v19 = vld [vmem:[#allocation4 + $0x48] sm:$0xff] }
  0xc9   : > { %892 = vmatpush1.bf16.msra.mxu0 %v3354_v20  ;;  %919 = vmatprep.mubr.bf16.mxu0 %v4235_v0  ;;  %v516_v20 = vld [vmem:[#allocation4 + $0x68] sm:$0xff] }
  0xca   : > { %893 = vmatprep.subr.bf16.mxu0 %v3347_v23  ;;  %v3332_v23 = vcombine.low %v520_v14, %v524_v15  ;;  %v3325_v21 = vcombine.high %v512_v19, %v516_v20  ;;  %v3667_v14 = vld [vmem:[#allocation7 + $0x94] ss:$24 sps:$4 sm:$0xff]   ;;  %v3665_v15 = vld [vmem:[#allocation7 + $0x90] ss:$24 sps:$4 sm:$0xff]  }
  0xcd   : > { %894 = vmatpush1.bf16.msra.mxu0 %v3346_v24  ;;  %v508_v24 = vld [vmem:[#allocation4 + $0x28] sm:$0xff] }
  0xce   : > { %895 = vmatprep.subr.bf16.mxu0 %v3339_v25  ;;  %v3324_v25 = vcombine.low %v512_v19, %v516_v20  ;;  %v3317_v27 = vcombine.high %v504_v22, %v508_v24  ;;  %v3671_v19 = vld [vmem:[#allocation7 + $0x60] ss:$24 sps:$4 sm:$0xff]   ;;  %v3676_v20 = vld [vmem:[#allocation7 + $0x6c] ss:$24 sps:$4 sm:$0xff]  }
  0xd1   : > { %896 = vmatpush1.bf16.msra.mxu0 %v3338_v28  ;;  %v562_v28 = vld [vmem:[#allocation4 + $0x1d8] sm:$0xff] }
  0xd2   : > { %897 = vmatprep.subr.bf16.mxu0 %v3331_v29  ;;  %v566_v29 = vld [vmem:[#allocation4 + $0x1f8] sm:$0xff] }
  0xd3   : > { %v3377_v31 = vcombine.high %v562_v28, %v566_v29 }
  0xd5   : > { %898 = vmatpush1.bf16.msra.mxu0 %v3330_v30  ;;  %v3316_v30 = vcombine.low %v504_v22, %v508_v24  ;;  %v3677_v22 = vld [vmem:[#allocation7 + $0x30] ss:$24 sps:$4 sm:$0xff]   ;;  %v3682_v24 = vld [vmem:[#allocation7 + $0x3c] ss:$24 sps:$4 sm:$0xff]  }
  0xd6   : > { %899 = vmatprep.subr.bf16.mxu0 %v3323_v34  ;;  %v3376_v34 = vcombine.low %v562_v28, %v566_v29  ;;  %v3688_v28 = vld [vmem:[#allocation7 + $0xc] ss:$24 sps:$4 sm:$0xff]   ;;  %v3686_v29 = vld [vmem:[#allocation7 + $0x8] ss:$24 sps:$4 sm:$0xff]  }
  0xd9   : > { %900 = vmatpush1.bf16.msra.mxu0 %v3322_v36  ;;  %v546_v36 = vld [vmem:[#allocation4 + $0x158] sm:$0xff] }
  0xda   : > { %901 = vmatprep.subr.bf16.mxu0 %v3315_v42  ;;  %v3361_v39 = vcombine.high %v546_v36, %v550_v37  ;;  %v3360_v42 = vcombine.low %v546_v36, %v550_v37  ;;  %v3700_v36 = vld [vmem:[#allocation7 + $0x2ac] ss:$24 sps:$4 sm:$0xff]   ;;  %v3698_v37 = vld [vmem:[#allocation7 + $0x2a8] ss:$24 sps:$4 sm:$0xff]  }
  0xdd   : > { %902 = vmatpush1.bf16.msra.mxu0 %v3314_v44  ;;  %v530_v44 = vld [vmem:[#allocation4 + $0xd8] sm:$0xff] }
  0xde   : > { %960 = vmatprep.subr.bf16.mxu0 %v3373_v49  ;;  %v3345_v47 = vcombine.high %v530_v44, %v534_v45  ;;  %v526_v49 = vld [vmem:[#allocation4 + $0xb8] sm:$0xff] }
  0xdf   : > { %v3336_v55 = vcombine.low %v522_v48, %v526_v49 }
 0x180   : > { %v3563_v52 = vpop.f32.mrf.mxu0 }
 0x182   : > { %v468_v53 = vpop.f32.mrf.mxu0 }
 0x184   : > { %v3564_v54 = vpop.f32.mrf.mxu0 }
 0x185   : > { %v4421_v6 = vpack.c.bf16 %v3564_v54, %v3563_v52  ;;  %v3337_v52 = vcombine.high %v522_v48, %v526_v49  ;;  %v518_v54 = vld [vmem:[#allocation4 + $0x78] sm:$0xff] }
 0x186   : > { %v471_v57 = vpop.f32.mrf.mxu0  ;;  %v3718_v48 = vld [vmem:[#allocation7 + $0x21c] ss:$24 sps:$4 sm:$0xff]   ;;  %v3716_v49 = vld [vmem:[#allocation7 + $0x218] ss:$24 sps:$4 sm:$0xff]  }
 0x187   : > { %v4415_v58 = vpack.c.bf16 %v471_v57, %v468_v53  ;;  %v514_v53 = vld [vmem:[#allocation4 + $0x58] sm:$0xff] }
 0x188   : > { %v3567_v60 = vpop.f32.mrf.mxu0  ;;  %v3329_v56 = vcombine.high %v514_v53, %v518_v54  ;;  %v506_v57 = vld [vmem:[#allocation4 + $0x18] sm:$0xff] }
 0x189   : > { %920 = vmatmul.mubr.bf16.vlgmr.msra.gmra.mxu0 %v4415_v58  ;;  %1066 = vmatmul.mubr.bf16.vlgmr.msra.gmra.mxu1 %v4415_v58 }
 0x18a   : > { %961 = vmatpush1.bf16.msra.mxu0 %v3372_v50  ;;  %929 = vmatprep.mubr.bf16.mxu0 %v4235_v0  ;;  %v484_v2 = vpop.f32.mrf.mxu0  ;;  %v3344_v50 = vcombine.low %v530_v44, %v534_v45  ;;  %v3712_v44 = vld [vmem:[#allocation7 + $0x24c] ss:$24 sps:$4 sm:$0xff]   ;;  %v3710_v45 = vld [vmem:[#allocation7 + $0x248] ss:$24 sps:$4 sm:$0xff]  }
 0x18b   : > { %962 = vmatprep.subr.bf16.mxu0 %v3365_v59  ;;  %1075 = vmatprep.mubr.bf16.mxu1 %v4235_v0  ;;  %v510_v59 = vld [vmem:[#allocation4 + $0x38] sm:$0xff] }
 0x18c   : > { %v3568_v8 = vpop.f32.mrf.mxu0  ;;  %v3321_v61 = vcombine.high %v506_v57, %v510_v59  ;;  %v3320_v62 = vcombine.low %v506_v57, %v510_v59  ;;  %v3730_v57 = vld [vmem:[#allocation7 + $0x1bc] ss:$24 sps:$4 sm:$0xff]   ;;  %v3728_v59 = vld [vmem:[#allocation7 + $0x1b8] ss:$24 sps:$4 sm:$0xff]  }
 0x18d   : > { %v4433_v26 = vpack.c.bf16 %v3568_v8, %v3567_v60  ;;  %v3328_v60 = vcombine.low %v514_v53, %v518_v54  ;;  %v3658_v8 = vld [vmem:[#allocation7 + $0xfc] ss:$24 sps:$4 sm:$0xff]   ;;  %v3724_v53 = vld [vmem:[#allocation7 + $0x1ec] ss:$24 sps:$4 sm:$0xff]   ;;  %v3722_v54 = vld [vmem:[#allocation7 + $0x1e8] ss:$24 sps:$4 sm:$0xff]  }
 0x18e   : > { %963 = vmatpush1.bf16.msra.mxu0 %v3364_v63  ;;  %v487_v13 = vpop.f32.mrf.mxu0  ;;  %v3643_v63 = vld [vmem:[#allocation7 + $0x154] ss:$24 sps:$4 sm:$0xff]  }
 0x18f   : > { %964 = vmatprep.subr.bf16.mxu0 %v3357_v1  ;;  %v4427_v17 = vpack.c.bf16 %v487_v13, %v484_v2  ;;  %v3641_v1 = vld [vmem:[#allocation7 + $0x150] ss:$24 sps:$4 sm:$0xff]   ;;  %v3646_v2 = vld [vmem:[#allocation7 + $0x15c] ss:$24 sps:$4 sm:$0xff]   ;;  %2347 = vmatprep.subr.bf16.mxu1 %v3643_v63 }
 0x190   : > { %2348 = vmatpush1.bf16.msra.mxu1 %v3641_v1  ;;  %v3662_v13 = vld [vmem:[#allocation7 + $0xc8] ss:$24 sps:$4 sm:$0xff]   ;;  %v3739_v1 = vld [vmem:[#allocation7 + $0x164] ss:$24 sps:$4 sm:$0xff]  }
 0x191   : > { %930 = vmatmul.mubr.bf16.gmra.mxu0 %v4421_v6  ;;  %1076 = vmatmul.mubr.bf16.gmra.mxu1 %v4421_v6  ;;  %v3734_v63 = vld [vmem:[#allocation7 + $0x188] ss:$24 sps:$4 sm:$0xff]  }
 0x192   : > { %965 = vmatpush1.bf16.msra.mxu0 %v3356_v5  ;;  %939 = vmatprep.mubr.bf16.mxu0 %v4235_v0  ;;  %v3652_v5 = vld [vmem:[#allocation7 + $0x12c] ss:$24 sps:$4 sm:$0xff]  }
 0x193   : > { %966 = vmatprep.subr.bf16.mxu0 %v3349_v7  ;;  %1085 = vmatprep.mubr.bf16.mxu1 %v4235_v0  ;;  %v3655_v7 = vld [vmem:[#allocation7 + $0xf4] ss:$24 sps:$4 sm:$0xff]  }
 0x196   : > { %967 = vmatpush1.bf16.msra.mxu0 %v3348_v11  ;;  %v3659_v11 = vld [vmem:[#allocation7 + $0xc0] ss:$24 sps:$4 sm:$0xff]  }
 0x197   : > { %968 = vmatprep.subr.bf16.mxu0 %v3341_v12  ;;  %v3664_v12 = vld [vmem:[#allocation7 + $0xcc] ss:$24 sps:$4 sm:$0xff]  }
 0x199   : > { %940 = vmatmul.mubr.bf16.gmra.mxu0 %v4427_v17  ;;  %1086 = vmatmul.mubr.bf16.gmra.mxu1 %v4427_v17 }
 0x19a   : > { %969 = vmatpush1.bf16.msra.mxu0 %v3340_v16  ;;  %949 = vmatprep.mubr.bf16.mxu0 %v4235_v0  ;;  %v3670_v16 = vld [vmem:[#allocation7 + $0x9c] ss:$24 sps:$4 sm:$0xff]  }
 0x19b   : > { %970 = vmatprep.subr.bf16.mxu0 %v3333_v18  ;;  %1095 = vmatprep.mubr.bf16.mxu1 %v4235_v0  ;;  %v3673_v18 = vld [vmem:[#allocation7 + $0x64] ss:$24 sps:$4 sm:$0xff]  }
 0x19e   : > { %971 = vmatpush1.bf16.msra.mxu0 %v3332_v23  ;;  %v3674_v23 = vld [vmem:[#allocation7 + $0x68] ss:$24 sps:$4 sm:$0xff]  }
 0x19f   : > { %972 = vmatprep.subr.bf16.mxu0 %v3325_v21  ;;  %v3679_v21 = vld [vmem:[#allocation7 + $0x34] ss:$24 sps:$4 sm:$0xff]  }
 0x1a1   : > { %950 = vmatmul.mubr.bf16.gmra.mxu0 %v4433_v26  ;;  %1096 = vmatmul.mubr.bf16.gmra.mxu1 %v4433_v26 }
 0x1a2   : > { %973 = vmatpush1.bf16.msra.mxu0 %v3324_v25  ;;  %992 = vmatprep.mubr.bf16.mxu0 %v4235_v0  ;;  %v3680_v25 = vld [vmem:[#allocation7 + $0x38] ss:$24 sps:$4 sm:$0xff]  }
 0x1a3   : > { %974 = vmatprep.subr.bf16.mxu0 %v3317_v27  ;;  %v3683_v27 = vld [vmem:[#allocation7] ss:$24 sps:$4 sm:$0xff]  }
 0x1a6   : > { %975 = vmatpush1.bf16.msra.mxu0 %v3316_v30  ;;  %v3691_v30 = vld [vmem:[#allocation7 + $0x2d4] ss:$24 sps:$4 sm:$0xff]  }
 0x1a7   : > { %1106 = vmatprep.subr.bf16.mxu0 %v3377_v31  ;;  %v3689_v31 = vld [vmem:[#allocation7 + $0x2d0] ss:$24 sps:$4 sm:$0xff]  }
 0x1a9   : > { %993 = vmatmul.mubr.bf16.vlgmr.msra.gmra.mxu0 %v4415_v58 }
 0x1aa   : > { %1107 = vmatpush1.bf16.msra.mxu0 %v3376_v34  ;;  %1002 = vmatprep.mubr.bf16.mxu0 %v4235_v0  ;;  %v3697_v34 = vld [vmem:[#allocation7 + $0x2a4] ss:$24 sps:$4 sm:$0xff]  }
 0x1ab   : > { %1108 = vmatprep.subr.bf16.mxu0 %v3369_v35  ;;  %v3695_v35 = vld [vmem:[#allocation7 + $0x2a0] ss:$24 sps:$4 sm:$0xff]  }
 0x1ae   : > { %1109 = vmatpush1.bf16.msra.mxu0 %v3368_v38  ;;  %v3703_v38 = vld [vmem:[#allocation7 + $0x274] ss:$24 sps:$4 sm:$0xff]  }
 0x1af   : > { %1110 = vmatprep.subr.bf16.mxu0 %v3361_v39  ;;  %v3701_v39 = vld [vmem:[#allocation7 + $0x270] ss:$24 sps:$4 sm:$0xff]  }
 0x1b1   : > { %1003 = vmatmul.mubr.bf16.gmra.mxu0 %v4421_v6 }
 0x1b2   : > { %1111 = vmatpush1.bf16.msra.mxu0 %v3360_v42  ;;  %1012 = vmatprep.mubr.bf16.mxu0 %v4235_v0  ;;  %v3709_v42 = vld [vmem:[#allocation7 + $0x244] ss:$24 sps:$4 sm:$0xff]  }
 0x1b3   : > { %1112 = vmatprep.subr.bf16.mxu0 %v3353_v43  ;;  %v3707_v43 = vld [vmem:[#allocation7 + $0x240] ss:$24 sps:$4 sm:$0xff]  }
 0x1b6   : > { %1113 = vmatpush1.bf16.msra.mxu0 %v3352_v46  ;;  %v3715_v46 = vld [vmem:[#allocation7 + $0x214] ss:$24 sps:$4 sm:$0xff]  }
 0x1b7   : > { %1114 = vmatprep.subr.bf16.mxu0 %v3345_v47  ;;  %v3713_v47 = vld [vmem:[#allocation7 + $0x210] ss:$24 sps:$4 sm:$0xff]  }
 0x1b9   : > { %1013 = vmatmul.mubr.bf16.gmra.mxu0 %v4427_v17 }
 0x1ba   : > { %1115 = vmatpush1.bf16.msra.mxu0 %v3344_v50  ;;  %1022 = vmatprep.mubr.bf16.mxu0 %v4235_v0  ;;  %v3721_v50 = vld [vmem:[#allocation7 + $0x1e4] ss:$24 sps:$4 sm:$0xff]  }
 0x1bb   : > { %1116 = vmatprep.subr.bf16.mxu0 %v3337_v52  ;;  %v3719_v52 = vld [vmem:[#allocation7 + $0x1e0] ss:$24 sps:$4 sm:$0xff]  }
 0x1be   : > { %1117 = vmatpush1.bf16.msra.mxu0 %v3336_v55  ;;  %v3727_v55 = vld [vmem:[#allocation7 + $0x1b4] ss:$24 sps:$4 sm:$0xff]  }
 0x1bf   : > { %1118 = vmatprep.subr.bf16.mxu0 %v3329_v56  ;;  %v3725_v56 = vld [vmem:[#allocation7 + $0x1b0] ss:$24 sps:$4 sm:$0xff]  }
 0x1c1   : > { %1023 = vmatmul.mubr.bf16.gmra.mxu0 %v4433_v26 }
 0x1c2   : > { %1119 = vmatpush1.bf16.msra.mxu0 %v3328_v60  ;;  %1138 = vmatprep.mubr.bf16.mxu0 %v4235_v0  ;;  %v3733_v60 = vld [vmem:[#allocation7 + $0x184] ss:$24 sps:$4 sm:$0xff]  }
 0x1c3   : > { %1120 = vmatprep.subr.bf16.mxu0 %v3321_v61  ;;  %v3731_v61 = vld [vmem:[#allocation7 + $0x180] ss:$24 sps:$4 sm:$0xff]  }
 0x1c6   : > { %1121 = vmatpush1.bf16.msra.mxu0 %v3320_v62  ;;  %v3736_v62 = vld [vmem:[#allocation7 + $0x18c] ss:$24 sps:$4 sm:$0xff]  }
 0x1c7   : > { %2420 = vmatprep.subr.bf16.mxu0 %v3646_v2 }
 0x1c9   : > { %1139 = vmatmul.mubr.bf16.vlgmr.msra.gmra.mxu0 %v4415_v58  ;;  %v3649_v58 = vld [vmem:[#allocation7 + $0x124] ss:$24 sps:$4 sm:$0xff]  }
 0x1ca   : > { %1148 = vmatprep.mubr.bf16.mxu0 %v4235_v0  ;;  %2421 = vmatpush1.bf16.msra.mxu0 %v3644_v3 }
 0x1cb   : > { %2349 = vmatprep.subr.bf16.mxu1 %v3649_v58  ;;  %2422 = vmatprep.subr.bf16.mxu0 %v3652_v5  ;;  %v1262_v5 = vshrl.u32 %v335_v51, 7 }
 0x1cc   : > { %2350 = vmatpush1.bf16.msra.mxu1 %v3647_v4 }
 0x1cd   : > { %2351 = vmatprep.subr.bf16.mxu1 %v3655_v7 }
 0x1d1   : > { %1149 = vmatmul.mubr.bf16.gmra.mxu0 %v4421_v6  ;;  %v3650_v6 = vld [vmem:[#allocation7 + $0x128] ss:$24 sps:$4 sm:$0xff]  }
 0x1d2   : > { %1158 = vmatprep.mubr.bf16.mxu0 %v4235_v0  ;;  %2423 = vmatpush1.bf16.msra.mxu0 %v3650_v6 }
 0x1d3   : > { %2424 = vmatprep.subr.bf16.mxu0 %v3658_v8  ;;  %v4464_v8 = vsub.s32 0, %v1262_v5 }
 0x1d6   : > { %2425 = vmatpush1.bf16.msra.mxu0 %v3656_v9 }
 0x1d7   : > { %2426 = vmatprep.subr.bf16.mxu0 %v3664_v12 }
 0x1d9   : > { %1159 = vmatmul.mubr.bf16.gmra.mxu0 %v4427_v17  ;;  %v3668_v17 = vld [vmem:[#allocation7 + $0x98] ss:$24 sps:$4 sm:$0xff]  }
 0x1da   : > { %1168 = vmatprep.mubr.bf16.mxu0 %v4235_v0  ;;  %v3653_v0 = vld [vmem:[#allocation7 + $0xf0] ss:$24 sps:$4 sm:$0xff]   ;;  %2427 = vmatpush1.bf16.msra.mxu0 %v3662_v13  ;;  %v4473_v13 = vsub.s32 1, %v1262_v5 }
 0x1db   : > { %2352 = vmatpush1.bf16.msra.mxu1 %v3653_v0  ;;  %2428 = vmatprep.subr.bf16.mxu0 %v3670_v16 }
 0x1dc   : > { %2353 = vmatprep.subr.bf16.mxu1 %v3661_v10  ;;  %v1415_v10 = vld [vmem:[%s5028_s4 + $0x2] sm:$0x3] }
 0x1dd   : > { %v4476_v51 = vrot.slane %v1415_v10, %v4464_v8 }
 0x1de   : > { %2429 = vmatpush1.bf16.msra.mxu0 %v3668_v17  ;;  %v4483_v17 = vrot.slane %v1415_v10, %v4473_v13 }
 0x1df   : > { %2354 = vmatpush1.bf16.msra.mxu1 %v3659_v11  ;;  %2430 = vmatprep.subr.bf16.mxu0 %v3676_v20 }
 0x1e0   : > { %2355 = vmatprep.subr.bf16.mxu1 %v3667_v14 }
 0x1e1   : > { %1169 = vmatmul.mubr.bf16.gmra.mxu0 %v4433_v26  ;;  %v3685_v26 = vld [vmem:[#allocation7 + $0x4] ss:$24 sps:$4 sm:$0xff]  }
 0x1e2   : > { %2431 = vmatpush1.bf16.msra.mxu0 %v3674_v23 }
 0x1e3   : > { %2356 = vmatpush1.bf16.msra.mxu1 %v3665_v15  ;;  %2432 = vmatprep.subr.bf16.mxu0 %v3682_v24 }
 0x1e4   : > { %2357 = vmatprep.subr.bf16.mxu1 %v3673_v18 }
 0x1e6   : > { %2433 = vmatpush1.bf16.msra.mxu0 %v3680_v25 }
 0x1e7   : > { %2358 = vmatpush1.bf16.msra.mxu1 %v3671_v19  ;;  %2434 = vmatprep.subr.bf16.mxu0 %v3688_v28 }
 0x1e8   : > { %2359 = vmatprep.subr.bf16.mxu1 %v3679_v21 }
 0x1ea   : > { %2435 = vmatpush1.bf16.msra.mxu0 %v3686_v29 }
 0x1eb   : > { %2360 = vmatpush1.bf16.msra.mxu1 %v3677_v22  ;;  %2436 = vmatprep.subr.bf16.mxu0 %v3694_v32 }
 0x1ec   : > { %2361 = vmatprep.subr.bf16.mxu1 %v3685_v26 }
 0x1ee   : > { %2437 = vmatpush2.bf16.msra.mxu0 %v3692_v33 }
 0x1ef   : > { %2362 = vmatpush1.bf16.msra.mxu1 %v3683_v27  ;;  %2438 = vmatprep.subr.bf16.mxu0 %v3700_v36 }
 0x1f0   : > { %2363 = vmatprep.subr.bf16.mxu1 %v3691_v30  ;;  %v1259_v30 = vld [vmem:[%s5028_s4] sm:$0x3] }
 0x1f2   : > { %2439 = vmatpush2.bf16.msra.mxu0 %v3698_v37 }
 0x1f3   : > { %2364 = vmatpush2.bf16.msra.mxu1 %v3689_v31  ;;  %2440 = vmatprep.subr.bf16.mxu0 %v3706_v40 }
 0x1f4   : > { %2365 = vmatprep.subr.bf16.mxu1 %v3697_v34  ;;  %v4505_v34 = vrot.slane %v1259_v30, %v4464_v8 }
 0x1f6   : > { %2441 = vmatpush2.bf16.msra.mxu0 %v3704_v41 }
 0x1f7   : > { %2366 = vmatpush2.bf16.msra.mxu1 %v3695_v35  ;;  %2442 = vmatprep.subr.bf16.mxu0 %v3712_v44 }
 0x1f8   : > { %2367 = vmatprep.subr.bf16.mxu1 %v3703_v38  ;;  %v4511_v38 = vrot.slane %v1259_v30, %v4473_v13 }
 0x1fa   : > { %2443 = vmatpush2.bf16.msra.mxu0 %v3710_v45 }
 0x1fb   : > { %2368 = vmatpush2.bf16.msra.mxu1 %v3701_v39  ;;  %2444 = vmatprep.subr.bf16.mxu0 %v3718_v48 }
 0x1fc   : > { %2369 = vmatprep.subr.bf16.mxu1 %v3709_v42 }
 0x1fe   : > { %2445 = vmatpush2.bf16.msra.mxu0 %v3716_v49 }
 0x1ff   : > { %2370 = vmatpush2.bf16.msra.mxu1 %v3707_v43  ;;  %2446 = vmatprep.subr.bf16.mxu0 %v3724_v53 }
 0x200   : > { %2371 = vmatprep.subr.bf16.mxu1 %v3715_v46 }
 0x202   : > { %2447 = vmatpush2.bf16.msra.mxu0 %v3722_v54 }
 0x203   : > { %2372 = vmatpush2.bf16.msra.mxu1 %v3713_v47  ;;  %2448 = vmatprep.subr.bf16.mxu0 %v3730_v57 }
 0x204   : > { %2373 = vmatprep.subr.bf16.mxu1 %v3721_v50 }
 0x206   : > { %2449 = vmatpush2.bf16.msra.mxu0 %v3728_v59 }
 0x207   : > { %2374 = vmatpush2.bf16.msra.mxu1 %v3719_v52  ;;  %2450 = vmatprep.subr.bf16.mxu0 %v3736_v62 }
 0x208   : > { %2375 = vmatprep.subr.bf16.mxu1 %v3727_v55 }
 0x20a   : > { %2451 = vmatpush2.bf16.msra.mxu0 %v3734_v63 }
 0x20b   : > { %2376 = vmatpush2.bf16.msra.mxu1 %v3725_v56 }
 0x20c   : > { %2377 = vmatprep.subr.bf16.mxu1 %v3733_v60 }
 0x20f   : > { %2378 = vmatpush2.bf16.msra.mxu1 %v3731_v61 }
 0x210   : > { %2493 = vmatprep.subr.bf16.mxu1 %v3739_v1 }
 0x249   : > { %v4453_v2 = vpop.f32.mrf.mxu0  ;;  %v1067_v58 = vpop.f32.mrf.mxu1 }
 0x24a   : > { %v1427_v18 = vadd.f32 %v4476_v51, %v1067_v58 }
 0x24b   : > { %v4455_v3 = vpop.f32.mrf.mxu0  ;;  %v1069_v7 = vpop.f32.mrf.mxu1 }
 0x24c   : > { %v1428_v21 = vadd.f32 %v4483_v17, %v1069_v7  ;;  %v3394_v22 = vmul.f32 -1.442695, %v1427_v18 }
 0x24d   : > { %v4457_v4 = vpop.f32.mrf.mxu0  ;;  %v1071_v11 = vpop.f32.mrf.mxu1 }
 0x24e   : > { %v3395_v27 = vmul.f32 -1.442695, %v1428_v21  ;;  %3785 = vpow2.f32 %v3394_v22  ;;  %v1429_v28 = vadd.f32 %v4476_v51, %v1071_v11 }
 0x24f   : > { %v4460_v6 = vpop.f32.mrf.mxu0  ;;  %v1073_v15 = vpop.f32.mrf.mxu1 }
 0x250   : > { %v1430_v31 = vadd.f32 %v4483_v17, %v1073_v15  ;;  %3787 = vpow2.f32 %v3395_v27  ;;  %v3396_v35 = vmul.f32 -1.442695, %v1429_v28 }
 0x251   : > { %v4462_v0 = vpop.f32.mrf.mxu0  ;;  %v1077_v20 = vpop.f32.mrf.mxu1 }
 0x252   : > { %v1431_v36 = vadd.f32 %v4476_v51, %v1077_v20  ;;  %v3397_v39 = vmul.f32 -1.442695, %v1430_v31  ;;  %3789 = vpow2.f32 %v3396_v35 }
 0x253   : > { %v4466_v9 = vpop.f32.mrf.mxu0  ;;  %v1079_v25 = vpop.f32.mrf.mxu1 }
 0x254   : > { %v1432_v40 = vadd.f32 %v4483_v17, %v1079_v25  ;;  %v3398_v44 = vmul.f32 -1.442695, %v1431_v36  ;;  %3791 = vpow2.f32 %v3397_v39 }
 0x255   : > { %v4471_v12 = vpop.f32.mrf.mxu0  ;;  %v1081_v32 = vpop.f32.mrf.mxu1 }
 0x256   : > { %v1433_v45 = vadd.f32 %v4476_v51, %v1081_v32  ;;  %v3399_v49 = vmul.f32 -1.442695, %v1432_v40 }
 0x257   : > { %v4478_v14 = vpop.f32.mrf.mxu0  ;;  %v1083_v41 = vpop.f32.mrf.mxu1 }
 0x258   : > { %v1434_v50 = vadd.f32 %v4483_v17, %v1083_v41  ;;  %v3400_v56 = vmul.f32 -1.442695, %v1433_v45 }
 0x259   : > { %v4480_v16 = vpop.f32.mrf.mxu0  ;;  %v1087_v52 = vpop.f32.mrf.mxu1 }
 0x25a   : > { %v3401_v62 = vmul.f32 -1.442695, %v1434_v50  ;;  %v1435_v63 = vadd.f32 %v4476_v51, %v1087_v52 }
 0x25b   : > { %v4486_v19 = vpop.f32.mrf.mxu0  ;;  %v3786_v59 = vpop.eup %3785 }
 0x25c   : > { %v1089_v1 = vpop.f32.mrf.mxu1  ;;  %v1491_v11 = vadd.f32 1.0, %v3786_v59  ;;  %v3402_v22 = vmul.f32 -1.442695, %v1435_v63 }
 0x25d   : > { %v4488_v23 = vpop.f32.mrf.mxu0  ;;  %v3788_v10 = vpop.eup %3787  ;;  %v1436_v18 = vadd.f32 %v4483_v17, %v1089_v1 }
 0x25e   : > { %v1492_v27 = vadd.f32 1.0, %v3788_v10  ;;  %v1091_v31 = vpop.f32.mrf.mxu1 }
 0x25f   : > { %v4491_v24 = vpop.f32.mrf.mxu0  ;;  %v3790_v35 = vpop.eup %3789  ;;  %v3403_v36 = vmul.f32 -1.442695, %v1436_v18 }
 0x260   : > { %v1093_v50 = vpop.f32.mrf.mxu1 }
 0x261   : > { %v4493_v26 = vpop.f32.mrf.mxu0  ;;  %v1438_v63 = vadd.f32 %v4483_v17, %v1093_v50 }
 0x263   : > { %v4496_v29 = vpop.f32.mrf.mxu0 }
 0x265   : > { %v4502_v33 = vpop.f32.mrf.mxu0 }
 0x267   : > { %v4508_v37 = vpop.f32.mrf.mxu0 }
 0x269   : > { %v994_v42 = vpop.f32.mrf.mxu0 }
 0x26a   : > { %v1271_v43 = vadd.f32 %v4505_v34, %v994_v42  ;;  %v3792_v42 = vpop.eup %3791 }
 0x26b   : > { %v996_v46 = vpop.f32.mrf.mxu0 }
 0x26c   : > { %v3378_v47 = vmul.f32 -1.442695, %v1271_v43  ;;  %v1272_v48 = vadd.f32 %v4511_v38, %v996_v46  ;;  %v1437_v43 = vadd.f32 %v4476_v51, %v1091_v31 }
 0x26d   : > { %v998_v53 = vpop.f32.mrf.mxu0 }
 0x26e   : > { %3793 = vpow2.f32 %v3378_v47  ;;  %v3379_v54 = vmul.f32 -1.442695, %v1272_v48  ;;  %v1273_v55 = vadd.f32 %v4505_v34, %v998_v53  ;;  %v1493_v47 = vadd.f32 1.0, %v3790_v35 }
 0x26f   : > { %3795 = vpow2.f32 %v3398_v44  ;;  %v1000_v57 = vpop.f32.mrf.mxu0  ;;  %v3404_v59 = vmul.f32 -1.442695, %v1437_v43 }
 0x270   : > { %3797 = vpow2.f32 %v3379_v54  ;;  %v3380_v60 = vmul.f32 -1.442695, %v1273_v55  ;;  %v1274_v61 = vadd.f32 %v4511_v38, %v1000_v57 }
 0x271   : > { %3799 = vpow2.f32 %v3399_v49  ;;  %v1004_v58 = vpop.f32.mrf.mxu0 }
 0x272   : > { %3801 = vpow2.f32 %v3380_v60  ;;  %v3381_v5 = vmul.f32 -1.442695, %v1274_v61  ;;  %v1275_v7 = vadd.f32 %v4505_v34, %v1004_v58 }
 0x273   : > { %3803 = vpow2.f32 %v3400_v56  ;;  %v1006_v15 = vpop.f32.mrf.mxu0 }
 0x274   : > { %3805 = vpow2.f32 %v3381_v5  ;;  %v3382_v20 = vmul.f32 -1.442695, %v1275_v7  ;;  %v1276_v21 = vadd.f32 %v4511_v38, %v1006_v15 }
 0x275   : > { %3807 = vpow2.f32 %v3401_v62  ;;  %v1008_v25 = vpop.f32.mrf.mxu0  ;;  %v1494_v62 = vadd.f32 1.0, %v3792_v42 }
 0x276   : > { %3809 = vpow2.f32 %v3382_v20  ;;  %v3383_v28 = vmul.f32 -1.442695, %v1276_v21  ;;  %v1277_v30 = vadd.f32 %v4505_v34, %v1008_v25  ;;  %v3405_v25 = vmul.f32 -1.442695, %v1438_v63 }
 0x277   : > { %3811 = vrcp.f32 %v1491_v11  ;;  %v1010_v32 = vpop.f32.mrf.mxu0 }
 0x278   : > { %3813 = vpow2.f32 %v3383_v28  ;;  %v3384_v39 = vmul.f32 -1.442695, %v1277_v30  ;;  %v1278_v40 = vadd.f32 %v4511_v38, %v1010_v32 }
 0x279   : > { %3815 = vpow2.f32 %v3402_v22  ;;  %v1014_v41 = vpop.f32.mrf.mxu0 }
 0x27a   : > { %3817 = vrcp.f32 %v1492_v27  ;;  %v3385_v44 = vmul.f32 -1.442695, %v1278_v40  ;;  %v1279_v45 = vadd.f32 %v4505_v34, %v1014_v41 }
 0x27b   : > { %v3794_v46 = vpop.eup %3793  ;;  %3819 = vpow2.f32 %v3384_v39  ;;  %v1016_v48 = vpop.f32.mrf.mxu0 }
 0x27c   : > { %v3796_v49 = vpop.eup %3795  ;;  %3821 = vpow2.f32 %v3403_v36  ;;  %v1335_v52 = vadd.f32 1.0, %v3794_v46  ;;  %v3386_v54 = vmul.f32 -1.442695, %v1279_v45  ;;  %v1280_v55 = vadd.f32 %v4511_v38, %v1016_v48 }
 0x27d   : > { %v3798_v53 = vpop.eup %3797  ;;  %3823 = vpow2.f32 %v3385_v44  ;;  %v1018_v56 = vpop.f32.mrf.mxu0  ;;  %v1495_v43 = vadd.f32 1.0, %v3796_v49 }
 0x27e   : > { %v4529_v57 = vpop.eup %3799  ;;  %3825 = vrcp.f32 %v1335_v52  ;;  %v1336_v60 = vadd.f32 1.0, %v3798_v53  ;;  %v1281_v7 = vadd.f32 %v4505_v34, %v1018_v56  ;;  %v3387_v11 = vmul.f32 -1.442695, %v1280_v55 }
 0x27f   : > { %v3802_v61 = vpop.eup %3801  ;;  %3827 = vrcp.f32 %v1493_v47  ;;  %v1020_v1 = vpop.f32.mrf.mxu0  ;;  %v1563_v53 = vsub.f32 0.0, %v4453_v2  ;;  %v1564_v56 = vsub.f32 0.0, %v4455_v3 }
 0x280   : > { %v4532_v58 = vpop.eup %3803  ;;  %3829 = vrcp.f32 %v1336_v60  ;;  %v1337_v5 = vadd.f32 1.0, %v3802_v61  ;;  %v1282_v15 = vadd.f32 %v4511_v38, %v1020_v1  ;;  %v3388_v30 = vmul.f32 -1.442695, %v1281_v7  ;;  %v1097_v60 = vpop.f32.mrf.mxu1 }
 0x281   : > { %v3806_v10 = vpop.eup %3805  ;;  %3831 = vpow2.f32 %v3386_v54  ;;  %v1024_v18 = vpop.f32.mrf.mxu0 }
 0x282   : > { %v4536_v20 = vpop.eup %3807  ;;  %3833 = vpow2.f32 %v3404_v59  ;;  %v1338_v21 = vadd.f32 1.0, %v3806_v10  ;;  %v3389_v32 = vmul.f32 -1.442695, %v1282_v15  ;;  %v1283_v35 = vadd.f32 %v4505_v34, %v1024_v18 }
 0x283   : > { %v3810_v22 = vpop.eup %3809  ;;  %3835 = vrcp.f32 %v1494_v62  ;;  %v1026_v27 = vpop.f32.mrf.mxu0  ;;  %v1439_v18 = vadd.f32 %v4476_v51, %v1097_v60 }
 0x284   : > { %v4538_v28 = vpop.eup %3811  ;;  %3837 = vrcp.f32 %v1337_v5  ;;  %v1339_v40 = vadd.f32 1.0, %v3810_v22  ;;  %v1284_v41 = vadd.f32 %v4511_v38, %v1026_v27  ;;  %v3390_v48 = vmul.f32 -1.442695, %v1283_v35  ;;  %v1099_v22 = vpop.f32.mrf.mxu1 }
 0x285   : > { %v3814_v31 = vpop.eup %3813  ;;  %3839 = vpow2.f32 %v3387_v11  ;;  %v1028_v36 = vpop.f32.mrf.mxu0 }
 0x286   : > { %v4541_v39 = vpop.eup %3815  ;;  %3841 = vrcp.f32 %v1338_v21  ;;  %v1340_v45 = vadd.f32 1.0, %v3814_v31  ;;  %v1285_v46 = vadd.f32 %v4505_v34, %v1028_v36  ;;  %v3391_v54 = vmul.f32 -1.442695, %v1284_v41 }
 0x287   : > { %v4544_v42 = vpop.eup %3817  ;;  %3843 = vpow2.f32 %v3405_v25  ;;  %v1030_v50 = vpop.f32.mrf.mxu0  ;;  %v3406_v41 = vmul.f32 -1.442695, %v1439_v18 }
 0x288   : > { %v3820_v44 = vpop.eup %3819  ;;  %3845 = vpow2.f32 %v3388_v30  ;;  %v3392_v34 = vmul.f32 -1.442695, %v1285_v46  ;;  %v1286_v62 = vadd.f32 %v4511_v38, %v1030_v50 }
 0x289   : > { %v4547_v47 = vpop.eup %3821  ;;  %3847 = vpow2.f32 %v3389_v32  ;;  %v1341_v49 = vadd.f32 1.0, %v3820_v44  ;;  %v4554_v10 = vpop.f32.mrf.mxu0 }
 0x28a   : > { %v3824_v52 = vpop.eup %3823  ;;  %3849 = vrcp.f32 %v1339_v40  ;;  %v3393_v38 = vmul.f32 -1.442695, %v1286_v62 }
 0x28b   : > { %v3826_v55 = vpop.eup %3825  ;;  %3851 = vrcp.f32 %v1495_v43  ;;  %v1342_v1 = vadd.f32 1.0, %v3824_v52  ;;  %v4564_v35 = vpop.f32.mrf.mxu0  ;;  %v1440_v43 = vadd.f32 %v4483_v17, %v1099_v22  ;;  %v1496_v52 = vadd.f32 1.0, %v4529_v57 }
 0x28c   : > { %v4551_v59 = vpop.eup %3827  ;;  %v1565_v61 = vmul.f32 %v3826_v55, %v1563_v53  ;;  %3853 = vrcp.f32 %v1340_v45  ;;  %v1497_v57 = vadd.f32 1.0, %v4532_v58 }
 0x28d   : > { %v3830_v63 = vpop.eup %3829  ;;  %3855 = vpow2.f32 %v3390_v48  ;;  %v4572_v53 = vpop.f32.mrf.mxu0 }
 0x28e   : > { %v3832_v5 = vpop.eup %3831  ;;  %v1566_v7 = vmul.f32 %v3830_v63, %v1564_v56  ;;  %3857 = vpow2.f32 %v3391_v54  ;;  %v1567_v11 = vadd.f32 %v1565_v61, %v4453_v2 }
 0x28f   : > { %v4557_v15 = vpop.eup %3833  ;;  %3859 = vrcp.f32 %v1341_v49  ;;  %v1343_v31 = vadd.f32 1.0, %v3832_v5  ;;  %v3407_v49 = vmul.f32 -1.442695, %v1440_v43 }
 0x290   : > { %v4560_v21 = vpop.eup %3835  ;;  %3861 = vpow2.f32 %v3392_v34  ;;  %v1587_v25 = vsub.f32 %v1567_v11, %v4457_v4  ;;  %v1568_v27 = vadd.f32 %v1566_v7, %v4455_v3  ;;  %v4580_v7 = vpop.f32.mrf.mxu0 }
 0x291   : > { %v3838_v30 = vpop.eup %3837  ;;  %3863 = vrcp.f32 %v1342_v1 }
 0x292   : > { %v3840_v32 = vpop.eup %3839  ;;  %3865 = vtanh.f32 %v1568_v27  ;;  %v1588_v2 = vsub.f32 %v1568_v27, %v4460_v6  ;;  %v1589_v36 = vmul.f32 %v3838_v30, %v1587_v25 }
 0x293   : > { %v3842_v40 = vpop.eup %3841  ;;  %3867 = vtanh.f32 %v1567_v11  ;;  %v1344_v48 = vadd.f32 1.0, %v3840_v32 }
 0x294   : > { %v4568_v44 = vpop.eup %3843  ;;  %3869 = vpow2.f32 %v3393_v38  ;;  %v1591_v3 = vadd.f32 %v1589_v36, %v4457_v4  ;;  %v1590_v45 = vmul.f32 %v3842_v40, %v1588_v2  ;;  %v1101_v4 = vpop.f32.mrf.mxu1 }
 0x295   : > { %v3846_v46 = vpop.eup %3845  ;;  %3871 = vrcp.f32 %v1343_v31  ;;  %v1441_v22 = vadd.f32 %v4476_v51, %v1101_v4  ;;  %v4586_v2 = vpop.f32.mrf.mxu0 }
 0x296   : > { %v3848_v50 = vpop.eup %3847  ;;  %3873 = vtanh.f32 %v1591_v3  ;;  %v1611_v54 = vsub.f32 %v1591_v3, %v4462_v0  ;;  %v1592_v55 = vadd.f32 %v1590_v45, %v4460_v6  ;;  %v1345_v61 = vadd.f32 1.0, %v3846_v46  ;;  %v1103_v32 = vpop.f32.mrf.mxu1 }
 0x297   : > { %v3850_v56 = vpop.eup %3849  ;;  %3875 = vpow2.f32 %v3406_v41  ;;  %v1346_v5 = vadd.f32 1.0, %v3848_v50  ;;  %v3408_v41 = vmul.f32 -1.442695, %v1441_v22  ;;  %v1442_v46 = vadd.f32 %v4483_v17, %v1103_v32 }
 0x298   : > { %v4576_v60 = vpop.eup %3851  ;;  %3877 = vtanh.f32 %v1592_v55  ;;  %v1612_v34 = vsub.f32 %v1592_v55, %v4466_v9  ;;  %v1613_v62 = vmul.f32 %v3850_v56, %v1611_v54  ;;  %v1498_v56 = vadd.f32 1.0, %v4536_v20 }
 0x299   : > { %v3854_v63 = vpop.eup %3853  ;;  %3879 = vrcp.f32 %v1344_v48 }
 0x29a   : > { %v3856_v1 = vpop.eup %3855  ;;  %3881 = vrcp.f32 %v1496_v52  ;;  %v1615_v6 = vadd.f32 %v1613_v62, %v4462_v0  ;;  %v1614_v11 = vmul.f32 %v3854_v63, %v1612_v34  ;;  %v4592_v52 = vpop.f32.mrf.mxu0  ;;  %v3409_v63 = vmul.f32 -1.442695, %v1442_v46 }
 0x29b   : > { %v3858_v18 = vpop.eup %3857  ;;  %3883 = vpow2.f32 %v3407_v49  ;;  %v1347_v30 = vadd.f32 1.0, %v3856_v1  ;;  %v1499_v46 = vadd.f32 1.0, %v4541_v39 }
 0x29c   : > { %v3860_v38 = vpop.eup %3859  ;;  %3885 = vrcp.f32 %v1345_v61  ;;  %v1635_v25 = vsub.f32 %v1615_v6, %v4471_v12  ;;  %v1616_v27 = vadd.f32 %v1614_v11, %v4466_v9  ;;  %v1348_v43 = vadd.f32 1.0, %v3858_v18  ;;  %v4605_v11 = vpop.f32.mrf.mxu0 }
 0x29d   : > { %v3862_v58 = vpop.eup %3861  ;;  %3887 = vrcp.f32 %v1497_v57 }
 0x29e   : > { %v3864_v31 = vpop.eup %3863  ;;  %3889 = vrcp.f32 %v1346_v5  ;;  %v1636_v0 = vsub.f32 %v1616_v27, %v4478_v14  ;;  %v1637_v36 = vmul.f32 %v3860_v38, %v1635_v25  ;;  %v1349_v17 = vadd.f32 1.0, %v3862_v58 }
 0x29f   : > { %v3866_v40 = vpop.eup %3865  ;;  %3891 = vtanh.f32 %v1616_v27 }
 0x2a0   : > { %v3868_v51 = vpop.eup %3867  ;;  %3893 = vtanh.f32 %v1615_v6  ;;  %v1639_v3 = vadd.f32 %v1637_v36, %v4471_v12  ;;  %v1638_v9 = vmul.f32 %v3864_v31, %v1636_v0  ;;  %v1572_v50 = vsub.f32 %v3866_v40, %v4564_v35  ;;  %v4625_v0 = vpop.f32.mrf.mxu0 }
 0x2a1   : > { %v3870_v45 = vpop.eup %3869  ;;  %3895 = vrcp.f32 %v1347_v30  ;;  %v1571_v49 = vsub.f32 %v3868_v51, %v4554_v10  ;;  %v1500_v40 = vadd.f32 1.0, %v4547_v47  ;;  %v1501_v51 = vadd.f32 1.0, %v4557_v15 }
 0x2a2   : > { %v3872_v48 = vpop.eup %3871  ;;  %3897 = vtanh.f32 %v1639_v3  ;;  %v1659_v54 = vsub.f32 %v1639_v3, %v4480_v16  ;;  %v1640_v12 = vadd.f32 %v1638_v9, %v4478_v14  ;;  %v1350_v57 = vadd.f32 1.0, %v3870_v45  ;;  %v3742_v9 = vld [vmem:[#allocation7 + $0x134] ss:$24 sps:$4 sm:$0xff]  }
 0x2a3   : > { %v3874_v55 = vpop.eup %3873  ;;  %3899 = vpow2.f32 %v3408_v41  ;;  %v1574_v20 = vmul.f32 %v4544_v42, %v1572_v50  ;;  %v1573_v38 = vmul.f32 %v4538_v28, %v1571_v49  ;;  %v1502_v50 = vadd.f32 1.0, %v4568_v44 }
 0x2a4   : > { %v4598_v4 = vpop.eup %3875  ;;  %3901 = vrcp.f32 %v1348_v43  ;;  %v1595_v61 = vsub.f32 %v3874_v55, %v4572_v53  ;;  %v1661_v34 = vmul.f32 %v3872_v48, %v1659_v54  ;;  %v1660_v1 = vsub.f32 %v1640_v12, %v4486_v19  ;;  %v3737_v43 = vld [vmem:[#allocation7 + $0x160] ss:$24 sps:$4 sm:$0xff]   ;;  %v4643_v48 = vpop.f32.mrf.mxu0 }
 0x2a5   : > { %v3878_v62 = vpop.eup %3877  ;;  %3903 = vtanh.f32 %v1640_v12  ;;  %v4620_v32 = vadd.f32 %v1574_v20, %v4564_v35  ;;  %v4629_v41 = vadd.f32 %v1573_v38, %v4554_v10  ;;  %v3743_v38 = vld [vmem:[#allocation7 + $0x100] ss:$24 sps:$4 sm:$0xff]  }
 0x2a6   : > { %v3880_v5 = vpop.eup %3879  ;;  %v1597_v6 = vmul.f32 %v4551_v59, %v1595_v61  ;;  %v1596_v14 = vsub.f32 %v3878_v62, %v4580_v7  ;;  %v1663_v18 = vadd.f32 %v1661_v34, %v4480_v16  ;;  %3905 = vrcp.f32 %v1498_v56  ;;  %v3745_v34 = vld [vmem:[#allocation7 + $0x104] ss:$24 sps:$4 sm:$0xff]  }
 0x2a7   : > { %v4608_v22 = vpop.eup %3881  ;;  %v1662_v25 = vmul.f32 %v3880_v5, %v1660_v1  ;;  %3907 = vrcp.f32 %v1349_v17  ;;  %v3740_v17 = vld [vmem:[#allocation7 + $0x130] ss:$24 sps:$4 sm:$0xff]  }
 0x2a8   : > { %v4611_v27 = vpop.eup %3883  ;;  %v1598_v58 = vmul.f32 %v4560_v21, %v1596_v14  ;;  %v1683_v42 = vsub.f32 %v1663_v18, %v4488_v23  ;;  %3909 = vpow2.f32 %v3409_v63  ;;  %v4616_v30 = vadd.f32 %v1597_v6, %v4572_v53  ;;  %v4656_v63 = vpop.f32.mrf.mxu0 }
 0x2a9   : > { %v3886_v59 = vpop.eup %3885  ;;  %v1664_v16 = vadd.f32 %v1662_v25, %v4486_v19  ;;  %3911 = vrcp.f32 %v1350_v57 }
 0x2aa   : > { %v3888_v31 = vpop.eup %3887  ;;  %v4623_v28 = vadd.f32 %v1598_v58, %v4580_v7  ;;  %v1685_v21 = vmul.f32 %v3886_v59, %v1683_v42  ;;  %v4640_v47 = vpack.c.bf16 %v4616_v30, %v4629_v41  ;;  %v3748_v59 = vld [vmem:[#allocation7 + $0xd4] ss:$24 sps:$4 sm:$0xff]  }
 0x2ab   : > { %v3890_v36 = vpop.eup %3889  ;;  %3913 = vtanh.f32 %v1664_v16  ;;  %v1684_v19 = vsub.f32 %v1664_v16, %v4491_v24  ;;  %v1504_v16 = vadd.f32 1.0, %v4611_v27 }
 0x2ac   : > { %v3892_v53 = vpop.eup %3891  ;;  %3915 = vtanh.f32 %v1663_v18  ;;  %v1687_v35 = vadd.f32 %v1685_v21, %v4488_v23  ;;  %v4636_v7 = vpack.c.bf16 %v4623_v28, %v4620_v32 }
 0x2ad   : > { %v3894_v3 = vpop.eup %3893  ;;  %v1686_v10 = vmul.f32 %v3890_v36, %v1684_v19  ;;  %v1620_v54 = vsub.f32 %v3892_v53, %v4592_v52 }
 0x2ae   : > { %v3896_v45 = vpop.eup %3895  ;;  %3917 = vtanh.f32 %v1687_v35  ;;  %v1707_v23 = vsub.f32 %v1687_v35, %v4493_v26  ;;  %2379 = vmatprep.mubr.bf16.mxu1 %v4636_v7  ;;  %2452 = vmatprep.mubr.bf16.mxu0 %v4636_v7  ;;  %v1619_v56 = vsub.f32 %v3894_v3, %v4586_v2 }
 0x2af   : > { %v3898_v15 = vpop.eup %3897  ;;  %3919 = vrcp.f32 %v1500_v40  ;;  %v1688_v55 = vadd.f32 %v1686_v10, %v4491_v24  ;;  %2380 = vmatmul.mubr.bf16.vlgmr.msra.gmra.mxu1 %v4640_v47  ;;  %2453 = vmatmul.mubr.bf16.vlgmr.msra.gmra.mxu0 %v4640_v47  ;;  %v1622_v1 = vmul.f32 %v4608_v22, %v1620_v54  ;;  %v3751_v10 = vld [vmem:[#allocation7 + $0xa4] ss:$24 sps:$4 sm:$0xff]   ;;  %v3749_v54 = vld [vmem:[#allocation7 + $0xa0] ss:$24 sps:$4 sm:$0xff]  }
 0x2b0   : > { %v3900_v39 = vpop.eup %3899  ;;  %3921 = vrcp.f32 %v1501_v51  ;;  %v1643_v49 = vsub.f32 %v3898_v15, %v4605_v11  ;;  %v1709_v12 = vmul.f32 %v3896_v45, %v1707_v23  ;;  %2494 = vmatpush1.bf16.msra.mxu1 %v3737_v43  ;;  %v1621_v14 = vmul.f32 %v4576_v60, %v1619_v56  ;;  %v3754_v56 = vld [vmem:[#allocation7 + $0x74] ss:$24 sps:$4 sm:$0xff]  }
 0x2b1   : > { %v3902_v61 = vpop.eup %3901  ;;  %3923 = vtanh.f32 %v1688_v55  ;;  %v1708_v44 = vsub.f32 %v1688_v55, %v4496_v29  ;;  %2495 = vmatprep.subr.bf16.mxu1 %v3742_v9  ;;  %v4669_v60 = vadd.f32 %v1622_v1, %v4592_v52  ;;  %v1505_v53 = vadd.f32 1.0, %v3900_v39  ;;  %v3757_v1 = vld [vmem:[#allocation7 + $0x44] ss:$24 sps:$4 sm:$0xff]  }
 0x2b2   : > { %v3904_v24 = vpop.eup %3903  ;;  %3925 = vrcp.f32 %v1499_v46  ;;  %v1645_v62 = vmul.f32 %v3888_v31, %v1643_v49  ;;  %v1711_v57 = vadd.f32 %v1709_v12, %v4493_v26  ;;  %v1164_v31 = vpop.f32.mrf.mxu0  ;;  %v4676_v51 = vadd.f32 %v1621_v14, %v4586_v2 }
 0x2b3   : > { %3927 = vrcp.f32 %v1502_v50  ;;  %v1644_v5 = vsub.f32 %v3904_v24, %v4625_v0  ;;  %v1710_v20 = vmul.f32 %v3902_v61, %v1708_v44  ;;  %v3906_v6 = vpop.eup %3905  ;;  %v1503_v43 = vadd.f32 1.0, %v4598_v4  ;;  %v3752_v24 = vld [vmem:[#allocation7 + $0x70] ss:$24 sps:$4 sm:$0xff]  }
 0x2b4   : > { %v1731_v18 = vsub.f32 %v1711_v57, %v4502_v33  ;;  %2496 = vmatpush1.bf16.msra.mxu1 %v3740_v17  ;;  %v3908_v25 = vpop.eup %3907  ;;  %v4666_v22 = vadd.f32 %v1645_v62, %v4605_v11  ;;  %v1166_v3 = vpop.f32.mrf.mxu0 }
 0x2b5   : > { %v1646_v58 = vmul.f32 %v3906_v6, %v1644_v5  ;;  %v1712_v42 = vadd.f32 %v1710_v20, %v4496_v29  ;;  %2497 = vmatprep.subr.bf16.mxu1 %v3745_v34  ;;  %v3910_v26 = vpop.eup %3909 }
 0x2b6   : > { %v1733_v21 = vmul.f32 %v3908_v25, %v1731_v18  ;;  %v3912_v36 = vpop.eup %3911  ;;  %v4686_v2 = vpack.c.bf16 %v4666_v22, %v4676_v51  ;;  %v1170_v39 = vpop.f32.mrf.mxu0  ;;  %v3755_v25 = vld [vmem:[#allocation7 + $0x40] ss:$24 sps:$4 sm:$0xff]  }
 0x2b7   : > { %v4672_v40 = vadd.f32 %v1646_v58, %v4625_v0  ;;  %3929 = vtanh.f32 %v1712_v42  ;;  %v1732_v29 = vsub.f32 %v1712_v42, %v4508_v37  ;;  %v3746_v0 = vld [vmem:[#allocation7 + $0xd0] ss:$24 sps:$4 sm:$0xff]  }
 0x2b8   : > { %v3914_v19 = vpop.eup %3913  ;;  %3931 = vtanh.f32 %v1711_v57  ;;  %v1735_v11 = vadd.f32 %v1733_v21, %v4502_v33  ;;  %2498 = vmatpush1.bf16.msra.mxu1 %v3743_v38  ;;  %v1506_v33 = vadd.f32 1.0, %v3910_v26  ;;  %v1172_v57 = vpop.f32.mrf.mxu0 }
 0x2b9   : > { %v3916_v27 = vpop.eup %3915  ;;  %v1734_v35 = vmul.f32 %v3912_v36, %v1732_v29  ;;  %v4681_v52 = vpack.c.bf16 %v4672_v40, %v4669_v60  ;;  %2499 = vmatprep.subr.bf16.mxu1 %v3748_v59  ;;  %v1668_v45 = vsub.f32 %v3914_v19, %v4656_v63  ;;  %v3758_v36 = vld [vmem:[#allocation7 + $0x10] ss:$24 sps:$4 sm:$0xff]  }
 0x2ba   : > { %3933 = vtanh.f32 %v1735_v11  ;;  %v1667_v4 = vsub.f32 %v3916_v27, %v4643_v48  ;;  %v1174_v58 = vpop.f32.mrf.mxu0  ;;  %v3763_v11 = vld [vmem:[#allocation7 + $0x2e4] ss:$24 sps:$4 sm:$0xff]  }
 0x2bb   : > { %v3918_v9 = vpop.eup %3917  ;;  %3935 = vrcp.f32 %v1504_v16  ;;  %v1736_v46 = vadd.f32 %v1734_v35, %v4508_v37  ;;  %2389 = vmatprep.mubr.bf16.mxu1 %v4681_v52  ;;  %2462 = vmatprep.mubr.bf16.mxu0 %v4681_v52 }
 0x2bc   : > { %v3920_v23 = vpop.eup %3919  ;;  %3937 = vrcp.f32 %v1505_v53  ;;  %v1691_v15 = vsub.f32 %v3918_v9, %v1164_v31  ;;  %2390 = vmatmul.mubr.bf16.gmra.mxu1 %v4686_v2  ;;  %2463 = vmatmul.mubr.bf16.gmra.mxu0 %v4686_v2  ;;  %v1176_v53 = vpop.f32.mrf.mxu0  ;;  %v3761_v9 = vld [vmem:[#allocation7 + $0x2e0] ss:$24 sps:$4 sm:$0xff]  }
 0x2bd   : > { %v3922_v50 = vpop.eup %3921  ;;  %3939 = vtanh.f32 %v1736_v46  ;;  %2500 = vmatpush1.bf16.msra.mxu1 %v3746_v0  ;;  %v1670_v12 = vmul.f32 %v3920_v23, %v1668_v45  ;;  %v3766_v45 = vld [vmem:[#allocation7 + $0x2b4] ss:$24 sps:$4 sm:$0xff]  }
 0x2be   : > { %v3924_v55 = vpop.eup %3923  ;;  %3941 = vrcp.f32 %v1503_v43  ;;  %v1693_v37 = vmul.f32 %v3922_v50, %v1691_v15  ;;  %2501 = vmatprep.subr.bf16.mxu1 %v3751_v10  ;;  %v3764_v50 = vld [vmem:[#allocation7 + $0x2b0] ss:$24 sps:$4 sm:$0xff]  }
 0x2bf   : > { %v3926_v49 = vpop.eup %3925  ;;  %3943 = vrcp.f32 %v1506_v33  ;;  %v1692_v17 = vsub.f32 %v3924_v55, %v1166_v3  ;;  %v4698_v5 = vadd.f32 %v1670_v12, %v4656_v63  ;;  %v3760_v63 = vld [vmem:[#allocation7 + $0x14] ss:$24 sps:$4 sm:$0xff]   ;;  %v3769_v55 = vld [vmem:[#allocation7 + $0x284] ss:$24 sps:$4 sm:$0xff]   ;;  %v3773_v12 = vld [vmem:[#allocation7 + $0x220] ss:$24 sps:$4 sm:$0xff]  }
 0x2c0   : > { %v3928_v61 = vpop.eup %3927  ;;  %v1669_v44 = vmul.f32 %v3926_v49, %v1667_v4  ;;  %v4695_v62 = vadd.f32 %v1693_v37, %v1164_v31  ;;  %v3767_v37 = vld [vmem:[#allocation7 + $0x280] ss:$24 sps:$4 sm:$0xff]   ;;  %v3775_v49 = vld [vmem:[#allocation7 + $0x224] ss:$24 sps:$4 sm:$0xff]  }
 0x2c1   : > { %v1694_v34 = vmul.f32 %v3928_v61, %v1692_v17  ;;  %2502 = vmatpush1.bf16.msra.mxu1 %v3749_v54  ;;  %v3778_v17 = vld [vmem:[#allocation7 + $0x1f4] ss:$24 sps:$4 sm:$0xff]   ;;  %v3776_v61 = vld [vmem:[#allocation7 + $0x1f0] ss:$24 sps:$4 sm:$0xff]  }
 0x2c2   : > { %2503 = vmatprep.subr.bf16.mxu1 %v3754_v56  ;;  %v4703_v14 = vadd.f32 %v1669_v44, %v4643_v48  ;;  %v3770_v56 = vld [vmem:[#allocation7 + $0x250] ss:$24 sps:$4 sm:$0xff]   ;;  %v3781_v44 = vld [vmem:[#allocation7 + $0x1c4] ss:$24 sps:$4 sm:$0xff]  }
 0x2c3   : > { %v4700_v20 = vadd.f32 %v1694_v34, %v1166_v3  ;;  %v3779_v34 = vld [vmem:[#allocation7 + $0x1c0] ss:$24 sps:$4 sm:$0xff]  }
 0x2c4   : > { %v3930_v6 = vpop.eup %3929  ;;  %v4711_v42 = vpack.c.bf16 %v4695_v62, %v4703_v14 }
 0x2c5   : > { %v3932_v18 = vpop.eup %3931  ;;  %2504 = vmatpush1.bf16.msra.mxu1 %v3752_v24  ;;  %v4707_v38 = vpack.c.bf16 %v4700_v20, %v4698_v5  ;;  %v1716_v26 = vsub.f32 %v3930_v6, %v1172_v57  ;;  %v3784_v24 = vld [vmem:[#allocation7 + $0x194] ss:$24 sps:$4 sm:$0xff]  }
 0x2c6   : > { %2505 = vmatprep.subr.bf16.mxu1 %v3757_v1  ;;  %v1715_v16 = vsub.f32 %v3932_v18, %v1170_v39 }
 0x2c7   : > { %v3934_v59 = vpop.eup %3933  ;;  %2399 = vmatprep.mubr.bf16.mxu1 %v4707_v38  ;;  %2472 = vmatprep.mubr.bf16.mxu0 %v4707_v38 }
 0x2c8   : > { %v3936_v48 = vpop.eup %3935  ;;  %v1739_v31 = vsub.f32 %v3934_v59, %v1174_v58  ;;  %2400 = vmatmul.mubr.bf16.gmra.mxu1 %v4711_v42  ;;  %2473 = vmatmul.mubr.bf16.gmra.mxu0 %v4711_v42 }
 0x2c9   : > { %v3938_v21 = vpop.eup %3937  ;;  %2506 = vmatpush1.bf16.msra.mxu1 %v3755_v25  ;;  %v1718_v35 = vmul.f32 %v3936_v48, %v1716_v26 }
 0x2ca   : > { %v3940_v29 = vpop.eup %3939  ;;  %v1741_v19 = vmul.f32 %v3938_v21, %v1739_v31  ;;  %2507 = vmatprep.subr.bf16.mxu1 %v3760_v63 }
 0x2cb   : > { %v3942_v27 = vpop.eup %3941  ;;  %v1740_v0 = vsub.f32 %v3940_v29, %v1176_v53  ;;  %v4719_v46 = vadd.f32 %v1718_v35, %v1172_v57  ;;  %v2630_v57 = vld [vmem:[%s5030_s6] sm:$0x3] }
 0x2cc   : > { %v3944_v43 = vpop.eup %3943  ;;  %v1717_v3 = vmul.f32 %v3942_v27, %v1715_v16  ;;  %v4717_v33 = vadd.f32 %v1741_v19, %v1174_v58  ;;  %v4739_v1 = vrot.slane %v2630_v57, %v4464_v8  ;;  %v4742_v6 = vrot.slane %v2630_v57, %v4473_v13 }
 0x2cd   : > { %v1742_v10 = vmul.f32 %v3944_v43, %v1740_v0  ;;  %2508 = vmatpush1.bf16.msra.mxu1 %v3758_v36 }
 0x2ce   : > { %2509 = vmatprep.subr.bf16.mxu1 %v3763_v11  ;;  %v4723_v4 = vadd.f32 %v1717_v3, %v1170_v39  ;;  %v3772_v39 = vld [vmem:[#allocation7 + $0x254] ss:$24 sps:$4 sm:$0xff]  }
 0x2cf   : > { %v4721_v23 = vadd.f32 %v1742_v10, %v1176_v53 }
 0x2d0   : > { %v1769_v54 = vpack.c.bf16 %v4717_v33, %v4723_v4 }
 0x2d1   : > { %2510 = vmatpush2.bf16.msra.mxu1 %v3761_v9  ;;  %v1770_v15 = vpack.c.bf16 %v4721_v23, %v4719_v46 }
 0x2d2   : > { %2511 = vmatprep.subr.bf16.mxu1 %v3766_v45 }
 0x2d3   : > { %2409 = vmatprep.mubr.bf16.mxu1 %v1770_v15  ;;  %2482 = vmatprep.mubr.bf16.mxu0 %v1770_v15 }
 0x2d4   : > { %2410 = vmatmul.mubr.bf16.gmra.mxu1 %v1769_v54  ;;  %2483 = vmatmul.mubr.bf16.gmra.mxu0 %v1769_v54 }
 0x2d5   : > { %2512 = vmatpush2.bf16.msra.mxu1 %v3764_v50  ;;  %2525 = vmatprep.mubr.bf16.mxu1 %v4636_v7  ;;  %v3782_v7 = vld [vmem:[#allocation7 + $0x190] ss:$24 sps:$4 sm:$0xff]  }
 0x2d6   : > { %2513 = vmatprep.subr.bf16.mxu1 %v3769_v55 }
 0x2d9   : > { %2514 = vmatpush2.bf16.msra.mxu1 %v3767_v37 }
 0x2da   : > { %2515 = vmatprep.subr.bf16.mxu1 %v3772_v39 }
 0x2dd   : > { %2516 = vmatpush2.bf16.msra.mxu1 %v3770_v56 }
 0x2de   : > { %2517 = vmatprep.subr.bf16.mxu1 %v3775_v49 }
 0x2e1   : > { %2518 = vmatpush2.bf16.msra.mxu1 %v3773_v12 }
 0x2e2   : > { %2519 = vmatprep.subr.bf16.mxu1 %v3778_v17 }
 0x2e5   : > { %2520 = vmatpush2.bf16.msra.mxu1 %v3776_v61 }
 0x2e6   : > { %2521 = vmatprep.subr.bf16.mxu1 %v3781_v44 }
 0x2e9   : > { %2522 = vmatpush2.bf16.msra.mxu1 %v3779_v34 }
 0x2ea   : > { %2523 = vmatprep.subr.bf16.mxu1 %v3784_v24 }
 0x2ed   : > { %2524 = vmatpush2.bf16.msra.mxu1 %v3782_v7 }
 0x2f0   : > { %2526 = vmatmul.mubr.bf16.vlgmr.msra.gmra.mxu1 %v4640_v47 }
 0x2f1   : > { %2535 = vmatprep.mubr.bf16.mxu1 %v4681_v52 }
 0x2f8   : > { %2536 = vmatmul.mubr.bf16.gmra.mxu1 %v4686_v2 }
 0x2f9   : > { %2545 = vmatprep.mubr.bf16.mxu1 %v4707_v38 }
 0x300   : > { %2546 = vmatmul.mubr.bf16.gmra.mxu1 %v4711_v42 }
 0x301   : > { %2555 = vmatprep.mubr.bf16.mxu1 %v1770_v15 }
 0x308   : > { %2556 = vmatmul.mubr.bf16.gmra.mxu1 %v1769_v54 }
 0x36f   : > { %v2454_v47 = vpop.f32.mrf.mxu0  ;;  %v4748_v48 = vpop.f32.mrf.mxu1 }
 0x370   : > { %v2642_v52 = vadd.f32 %v4739_v1, %v2454_v47 }
 0x371   : > { %v2456_v2 = vpop.f32.mrf.mxu0  ;;  %v4750_v31 = vpop.f32.mrf.mxu1 }
 0x372   : > { %v3506_v18 = vmul.f32 -1.442695, %v2642_v52  ;;  %v2643_v38 = vadd.f32 %v4742_v6, %v2456_v2 }
 0x373   : > { %v2458_v25 = vpop.f32.mrf.mxu0  ;;  %v4754_v11 = vpop.f32.mrf.mxu1 }
 0x374   : > { %3945 = vpow2.f32 %v3506_v18  ;;  %v3507_v58 = vmul.f32 -1.442695, %v2643_v38  ;;  %v2644_v42 = vadd.f32 %v4739_v1, %v2458_v25 }
 0x375   : > { %v2460_v63 = vpop.f32.mrf.mxu0  ;;  %v4758_v54 = vpop.f32.mrf.mxu1 }
 0x376   : > { %3947 = vpow2.f32 %v3507_v58  ;;  %v3508_v59 = vmul.f32 -1.442695, %v2644_v42  ;;  %v2645_v26 = vadd.f32 %v4742_v6, %v2460_v63 }
 0x378   : > { %3949 = vpow2.f32 %v3508_v59  ;;  %v3509_v16 = vmul.f32 -1.442695, %v2645_v26  ;;  %v2934_v59 = vsub.f32 0.0, %v4748_v48 }
 0x37a   : > { %3951 = vpow2.f32 %v3509_v16 }
 0x37c   : > { %v2464_v21 = vpop.f32.mrf.mxu0  ;;  %v4760_v56 = vpop.f32.mrf.mxu1 }
 0x37d   : > { %v2646_v36 = vadd.f32 %v4739_v1, %v2464_v21 }
 0x37e   : > { %v2466_v29 = vpop.f32.mrf.mxu0  ;;  %v4763_v44 = vpop.f32.mrf.mxu1 }
 0x37f   : > { %v3510_v19 = vmul.f32 -1.442695, %v2646_v36  ;;  %v2647_v53 = vadd.f32 %v4742_v6, %v2466_v29  ;;  %v2935_v29 = vsub.f32 0.0, %v4750_v31 }
 0x380   : > { %v2468_v27 = vpop.f32.mrf.mxu0  ;;  %v4767_v18 = vpop.f32.mrf.mxu1 }
 0x381   : > { %v3946_v35 = vpop.eup %3945  ;;  %3953 = vpow2.f32 %v3510_v19  ;;  %v3511_v0 = vmul.f32 -1.442695, %v2647_v53  ;;  %v2648_v43 = vadd.f32 %v4739_v1, %v2468_v27 }
 0x382   : > { %v2706_v3 = vadd.f32 1.0, %v3946_v35  ;;  %v2470_v10 = vpop.f32.mrf.mxu0  ;;  %v4772_v53 = vpop.f32.mrf.mxu1 }
 0x383   : > { %v3948_v9 = vpop.eup %3947  ;;  %3955 = vpow2.f32 %v3511_v0  ;;  %v3512_v45 = vmul.f32 -1.442695, %v2648_v43  ;;  %v2649_v15 = vadd.f32 %v4742_v6, %v2470_v10 }
 0x384   : > { %3957 = vrcp.f32 %v2706_v3  ;;  %v2707_v50 = vadd.f32 1.0, %v3948_v9 }
 0x385   : > { %v3950_v55 = vpop.eup %3949  ;;  %3959 = vpow2.f32 %v3512_v45  ;;  %v3513_v37 = vmul.f32 -1.442695, %v2649_v15 }
 0x386   : > { %3961 = vrcp.f32 %v2707_v50  ;;  %v2708_v39 = vadd.f32 1.0, %v3950_v55 }
 0x387   : > { %v3952_v49 = vpop.eup %3951  ;;  %3963 = vpow2.f32 %v3513_v37 }
 0x388   : > { %v2709_v12 = vadd.f32 1.0, %v3952_v49  ;;  %v2474_v17 = vpop.f32.mrf.mxu0  ;;  %3965 = vrcp.f32 %v2708_v39  ;;  %v4777_v10 = vpop.f32.mrf.mxu1 }
 0x389   : > { %v2650_v61 = vadd.f32 %v4739_v1, %v2474_v17 }
 0x38a   : > { %v2476_v34 = vpop.f32.mrf.mxu0  ;;  %3967 = vrcp.f32 %v2709_v12 }
 0x38b   : > { %v3514_v24 = vmul.f32 -1.442695, %v2650_v61  ;;  %v2651_v7 = vadd.f32 %v4742_v6, %v2476_v34  ;;  %v4788_v61 = vpop.f32.mrf.mxu1 }
 0x38c   : > { %v2478_v57 = vpop.f32.mrf.mxu0 }
 0x38d   : > { %3969 = vpow2.f32 %v3514_v24  ;;  %v3515_v47 = vmul.f32 -1.442695, %v2651_v7  ;;  %v2652_v52 = vadd.f32 %v4739_v1, %v2478_v57 }
 0x38e   : > { %v3954_v2 = vpop.eup %3953  ;;  %v2480_v38 = vpop.f32.mrf.mxu0 }
 0x38f   : > { %v2710_v25 = vadd.f32 1.0, %v3954_v2  ;;  %3971 = vpow2.f32 %v3515_v47  ;;  %v3516_v58 = vmul.f32 -1.442695, %v2652_v52  ;;  %v2653_v42 = vadd.f32 %v4742_v6, %v2480_v38 }
 0x390   : > { %v3956_v63 = vpop.eup %3955 }
 0x391   : > { %v3958_v26 = vpop.eup %3957  ;;  %3973 = vrcp.f32 %v2710_v25  ;;  %v2711_v16 = vadd.f32 1.0, %v3956_v63  ;;  %v3517_v21 = vmul.f32 -1.442695, %v2653_v42  ;;  %v4799_v42 = vpop.f32.mrf.mxu1 }
 0x392   : > { %v3960_v36 = vpop.eup %3959  ;;  %v2936_v19 = vmul.f32 %v3958_v26, %v2934_v59  ;;  %3975 = vpow2.f32 %v3516_v58 }
 0x393   : > { %v3962_v27 = vpop.eup %3961  ;;  %3977 = vrcp.f32 %v2711_v16  ;;  %v2712_v35 = vadd.f32 1.0, %v3960_v36 }
 0x394   : > { %v3964_v0 = vpop.eup %3963  ;;  %v4775_v43 = vadd.f32 %v2936_v19, %v4748_v48  ;;  %v2937_v3 = vmul.f32 %v3962_v27, %v2935_v29  ;;  %3979 = vpow2.f32 %v3517_v21  ;;  %v2484_v9 = vpop.f32.mrf.mxu0 }
 0x395   : > { %v2713_v45 = vadd.f32 1.0, %v3964_v0  ;;  %v2654_v15 = vadd.f32 %v4739_v1, %v2484_v9  ;;  %v3966_v39 = vpop.eup %3965  ;;  %3981 = vrcp.f32 %v2712_v35  ;;  %v4803_v19 = vpop.f32.mrf.mxu1 }
 0x396   : > { %v2964_v50 = vsub.f32 %v4775_v43, %v4754_v11  ;;  %v4783_v55 = vadd.f32 %v2937_v3, %v4750_v31  ;;  %v2486_v37 = vpop.f32.mrf.mxu0 }
 0x397   : > { %v3518_v49 = vmul.f32 -1.442695, %v2654_v15  ;;  %v2655_v48 = vadd.f32 %v4742_v6, %v2486_v37  ;;  %3983 = vrcp.f32 %v2713_v45  ;;  %v3968_v24 = vpop.eup %3967  ;;  %v4807_v3 = vpop.f32.mrf.mxu1 }
 0x398   : > { %v2965_v12 = vsub.f32 %v4783_v55, %v4758_v54  ;;  %v2966_v17 = vmul.f32 %v3966_v39, %v2964_v50  ;;  %v2488_v34 = vpop.f32.mrf.mxu0 }
 0x399   : > { %3985 = vpow2.f32 %v3518_v49  ;;  %v2656_v7 = vadd.f32 %v4739_v1, %v2488_v34  ;;  %v3519_v52 = vmul.f32 -1.442695, %v2655_v48 }
 0x39a   : > { %v3970_v31 = vpop.eup %3969  ;;  %v4792_v57 = vadd.f32 %v2966_v17, %v4754_v11  ;;  %v2967_v47 = vmul.f32 %v3968_v24, %v2965_v12  ;;  %v2490_v26 = vpop.f32.mrf.mxu0 }
 0x39b   : > { %v2714_v2 = vadd.f32 1.0, %v3970_v31  ;;  %v3520_v59 = vmul.f32 -1.442695, %v2656_v7  ;;  %v2657_v0 = vadd.f32 %v4742_v6, %v2490_v26 }
 0x39c   : > { %v3972_v38 = vpop.eup %3971  ;;  %v2994_v25 = vsub.f32 %v4792_v57, %v4760_v56  ;;  %v4797_v58 = vadd.f32 %v2967_v47, %v4758_v54 }
 0x39d   : > { %3987 = vrcp.f32 %v2714_v2  ;;  %v2715_v63 = vadd.f32 1.0, %v3972_v38  ;;  %v3521_v48 = vmul.f32 -1.442695, %v2657_v0 }
 0x39e   : > { %v3974_v1 = vpop.eup %3973  ;;  %v2995_v11 = vsub.f32 %v4797_v58, %v4763_v44  ;;  %3989 = vpow2.f32 %v3519_v52 }
 0x39f   : > { %v3976_v16 = vpop.eup %3975  ;;  %v2996_v21 = vmul.f32 %v3974_v1, %v2994_v25  ;;  %3991 = vrcp.f32 %v2715_v63 }
 0x3a0   : > { %v3978_v36 = vpop.eup %3977  ;;  %v2716_v29 = vadd.f32 1.0, %v3976_v16  ;;  %3993 = vpow2.f32 %v3520_v59 }
 0x3a1   : > { %v3980_v54 = vpop.eup %3979  ;;  %v2998_v27 = vadd.f32 %v2996_v21, %v4760_v56  ;;  %v2997_v35 = vmul.f32 %v3978_v36, %v2995_v11  ;;  %v4812_v56 = vpop.f32.mrf.mxu1 }
 0x3a2   : > { %3995 = vrcp.f32 %v2716_v29  ;;  %v3982_v15 = vpop.eup %3981  ;;  %v2717_v50 = vadd.f32 1.0, %v3980_v54 }
 0x3a3   : > { %v3024_v9 = vsub.f32 %v2998_v27, %v4767_v18  ;;  %v2999_v45 = vadd.f32 %v2997_v35, %v4763_v44  ;;  %v4817_v31 = vpop.f32.mrf.mxu1 }
 0x3a4   : > { %v3984_v37 = vpop.eup %3983  ;;  %3997 = vrcp.f32 %v2717_v50 }
 0x3a5   : > { %v3025_v39 = vsub.f32 %v2999_v45, %v4772_v53  ;;  %v3026_v49 = vmul.f32 %v3982_v15, %v3024_v9  ;;  %3999 = vpow2.f32 %v3521_v48 }
 0x3a6   : > { %v3986_v12 = vpop.eup %3985 }
 0x3a7   : > { %v3028_v17 = vadd.f32 %v3026_v49, %v4767_v18  ;;  %v3027_v6 = vmul.f32 %v3984_v37, %v3025_v39  ;;  %v2718_v34 = vadd.f32 1.0, %v3986_v12  ;;  %v2786_v18 = vld [vmem:[%s5030_s6 + $0x2] sm:$0x3] }
 0x3a8   : > { %v4827_v11 = vrot.slane %v2786_v18, %v4464_v8  ;;  %v4833_v21 = vrot.slane %v2786_v18, %v4473_v13 }
 0x3a9   : > { %v3054_v24 = vsub.f32 %v3028_v17, %v4777_v10  ;;  %v3029_v44 = vadd.f32 %v3027_v6, %v4772_v53  ;;  %4001 = vrcp.f32 %v2718_v34  ;;  %v4824_v53 = vpop.f32.mrf.mxu1 }
 0x3aa   : > { %v3988_v7 = vpop.eup %3987  ;;  %4003 = vtanh.f32 %v4775_v43 }
 0x3ab   : > { %v3990_v47 = vpop.eup %3989  ;;  %v3055_v52 = vsub.f32 %v3029_v44, %v4788_v61  ;;  %v3056_v2 = vmul.f32 %v3988_v7, %v3054_v24  ;;  %4005 = vtanh.f32 %v4783_v55 }
 0x3ac   : > { %v3992_v38 = vpop.eup %3991  ;;  %v2719_v1 = vadd.f32 1.0, %v3990_v47  ;;  %4007 = vtanh.f32 %v4792_v57 }
 0x3ad   : > { %v3058_v25 = vadd.f32 %v3056_v2, %v4777_v10  ;;  %v3057_v63 = vmul.f32 %v3992_v38, %v3055_v52  ;;  %v3994_v59 = vpop.eup %3993 }
 0x3ae   : > { %v2720_v54 = vadd.f32 1.0, %v3994_v59  ;;  %4009 = vrcp.f32 %v2719_v1 }
 0x3af   : > { %v3084_v26 = vsub.f32 %v3058_v25, %v4799_v42  ;;  %v3059_v16 = vadd.f32 %v3057_v63, %v4788_v61  ;;  %v3996_v36 = vpop.eup %3995  ;;  %4011 = vtanh.f32 %v4797_v58 }
 0x3b0   : > { %v2527_v10 = vpop.f32.mrf.mxu1  ;;  %4013 = vtanh.f32 %v2998_v27 }
 0x3b1   : > { %v3086_v29 = vmul.f32 %v3996_v36, %v3084_v26  ;;  %v3085_v8 = vsub.f32 %v3059_v16, %v4803_v19  ;;  %v2798_v43 = vadd.f32 %v4827_v11, %v2527_v10  ;;  %v3998_v55 = vpop.eup %3997  ;;  %4015 = vrcp.f32 %v2720_v54 }
 0x3b2   : > { %v2529_v35 = vpop.f32.mrf.mxu1  ;;  %v4000_v15 = vpop.eup %3999  ;;  %4017 = vtanh.f32 %v2999_v45 }
 0x3b3   : > { %v3088_v61 = vadd.f32 %v3086_v29, %v4799_v42  ;;  %v2799_v13 = vadd.f32 %v4833_v21, %v2529_v35  ;;  %v3522_v57 = vmul.f32 -1.442695, %v2798_v43  ;;  %v3087_v50 = vmul.f32 %v3998_v55, %v3085_v8 }
 0x3b4   : > { %v2531_v0 = vpop.f32.mrf.mxu1  ;;  %4019 = vtanh.f32 %v3028_v17  ;;  %v2721_v45 = vadd.f32 1.0, %v4000_v15 }
 0x3b5   : > { %v3114_v9 = vsub.f32 %v3088_v61, %v4807_v3  ;;  %v2800_v37 = vadd.f32 %v4827_v11, %v2531_v0  ;;  %v3523_v58 = vmul.f32 -1.442695, %v2799_v13  ;;  %4021 = vtanh.f32 %v3029_v44 }
 0x3b6   : > { %v2533_v39 = vpop.f32.mrf.mxu1  ;;  %v4002_v49 = vpop.eup %4001  ;;  %4023 = vpow2.f32 %v3522_v57  ;;  %v3089_v34 = vadd.f32 %v3087_v50, %v4803_v19 }
 0x3b7   : > { %v2801_v42 = vadd.f32 %v4833_v21, %v2533_v39  ;;  %v3116_v48 = vmul.f32 %v4002_v49, %v3114_v9  ;;  %v3524_v12 = vmul.f32 -1.442695, %v2800_v37  ;;  %4025 = vtanh.f32 %v3058_v25  ;;  %v4849_v52 = vpop.eup %4003 }
 0x3b8   : > { %v2537_v27 = vpop.f32.mrf.mxu1  ;;  %4027 = vpow2.f32 %v3523_v58  ;;  %v4851_v2 = vpop.eup %4005  ;;  %v3115_v19 = vsub.f32 %v3089_v34, %v4812_v56 }
 0x3b9   : > { %v2802_v6 = vadd.f32 %v4827_v11, %v2537_v27  ;;  %v3118_v7 = vadd.f32 %v3116_v48, %v4807_v3  ;;  %v3525_v47 = vmul.f32 -1.442695, %v2801_v42  ;;  %4029 = vtanh.f32 %v3059_v16  ;;  %v4854_v25 = vpop.eup %4007 }
 0x3ba   : > { %v2539_v24 = vpop.f32.mrf.mxu1  ;;  %4031 = vpow2.f32 %v3524_v12 }
 0x3bb   : > { %v2803_v17 = vadd.f32 %v4833_v21, %v2539_v24  ;;  %v3526_v18 = vmul.f32 -1.442695, %v2802_v6  ;;  %4033 = vrcp.f32 %v2721_v45  ;;  %v4010_v59 = vpop.eup %4009  ;;  %v3144_v1 = vsub.f32 %v3118_v7, %v4817_v31 }
 0x3bc   : > { %v2541_v44 = vpop.f32.mrf.mxu1  ;;  %4035 = vpow2.f32 %v3525_v47  ;;  %v4859_v36 = vpop.eup %4011  ;;  %v3117_v35 = vmul.f32 %v4010_v59, %v3115_v19 }
 0x3bd   : > { %v2804_v38 = vadd.f32 %v4827_v11, %v2541_v44  ;;  %v3527_v3 = vmul.f32 -1.442695, %v2803_v17  ;;  %4037 = vtanh.f32 %v3088_v61  ;;  %v4861_v29 = vpop.eup %4013 }
 0x3be   : > { %v2543_v63 = vpop.f32.mrf.mxu1  ;;  %4039 = vpow2.f32 %v3526_v18  ;;  %v4016_v43 = vpop.eup %4015  ;;  %v3119_v58 = vadd.f32 %v3117_v35, %v4812_v56 }
 0x3bf   : > { %v3528_v26 = vmul.f32 -1.442695, %v2804_v38  ;;  %v2805_v16 = vadd.f32 %v4833_v21, %v2543_v63  ;;  %4041 = vpow2.f32 %v3527_v3  ;;  %v4864_v0 = vpop.eup %4017  ;;  %v3146_v55 = vmul.f32 %v4016_v43, %v3144_v1 }
 0x3c0   : > { %v2547_v10 = vpop.f32.mrf.mxu1 }
 0x3c1   : > { %v3529_v54 = vmul.f32 -1.442695, %v2805_v16  ;;  %v2806_v8 = vadd.f32 %v4827_v11, %v2547_v10  ;;  %4043 = vpow2.f32 %v3528_v26  ;;  %v4867_v15 = vpop.eup %4019  ;;  %v3148_v27 = vadd.f32 %v3146_v55, %v4817_v31 }
 0x3c2   : > { %v2549_v13 = vpop.f32.mrf.mxu1  ;;  %v4869_v50 = vpop.eup %4021 }
 0x3c3   : > { %v3530_v9 = vmul.f32 -1.442695, %v2806_v8  ;;  %v2807_v57 = vadd.f32 %v4833_v21, %v2549_v13  ;;  %4045 = vpow2.f32 %v3529_v54  ;;  %v4024_v49 = vpop.eup %4023 }
 0x3c4   : > { %v2551_v61 = vpop.f32.mrf.mxu1  ;;  %v4873_v48 = vpop.eup %4025  ;;  %v2862_v17 = vadd.f32 1.0, %v4024_v49 }
 0x3c5   : > { %4047 = vpow2.f32 %v3530_v9  ;;  %v3531_v37 = vmul.f32 -1.442695, %v2807_v57  ;;  %v2808_v39 = vadd.f32 %v4827_v11, %v2551_v61  ;;  %v4028_v45 = vpop.eup %4027  ;;  %v3145_v57 = vsub.f32 %v3119_v58, %v4824_v53 }
 0x3c6   : > { %4049 = vtanh.f32 %v3089_v34  ;;  %v2553_v42 = vpop.f32.mrf.mxu1  ;;  %v4877_v47 = vpop.eup %4029  ;;  %v2863_v31 = vadd.f32 1.0, %v4028_v45 }
 0x3c7   : > { %4051 = vpow2.f32 %v3531_v37  ;;  %v3532_v12 = vmul.f32 -1.442695, %v2808_v39  ;;  %v2809_v6 = vadd.f32 %v4833_v21, %v2553_v42  ;;  %v4032_v56 = vpop.eup %4031 }
 0x3c8   : > { %4053 = vtanh.f32 %v3118_v7  ;;  %v2557_v24 = vpop.f32.mrf.mxu1  ;;  %v4034_v38 = vpop.eup %4033  ;;  %v2864_v1 = vadd.f32 1.0, %v4032_v56 }
 0x3c9   : > { %4055 = vpow2.f32 %v3532_v12  ;;  %v3533_v44 = vmul.f32 -1.442695, %v2809_v6  ;;  %v2810_v34 = vadd.f32 %v4827_v11, %v2557_v24  ;;  %v4036_v63 = vpop.eup %4035 }
 0x3ca   : > { %4057 = vtanh.f32 %v3119_v58  ;;  %v2559_v18 = vpop.f32.mrf.mxu1  ;;  %v4881_v59 = vpop.eup %4037  ;;  %v2865_v43 = vadd.f32 1.0, %v4036_v63 }
 0x3cb   : > { %4059 = vtanh.f32 %v3148_v27  ;;  %v3534_v19 = vmul.f32 -1.442695, %v2810_v34  ;;  %v2811_v3 = vadd.f32 %v4833_v21, %v2559_v18  ;;  %v4040_v10 = vpop.eup %4039  ;;  %v4894_v18 = vpop.permute.xlu0 %2951 }
 0x3cc   : > { %4061 = vpow2.f32 %v3533_v44  ;;  %v2561_v7 = vpop.f32.mrf.mxu1  ;;  %v4042_v8 = vpop.eup %4041  ;;  %v2866_v61 = vadd.f32 1.0, %v4040_v10  ;;  %vm2953_vm1 = vcmp.eq.s32.totalorder %v4894_v18, 1 }
 0x3cd   : > { %4063 = vrcp.f32 %v2862_v17  ;;  %v3535_v26 = vmul.f32 -1.442695, %v2811_v3  ;;  %v2812_v16 = vadd.f32 %v4827_v11, %v2561_v7  ;;  %v2867_v49 = vadd.f32 1.0, %v4042_v8 }
 0x3ce   : > { %4065 = vpow2.f32 %v3534_v19  ;;  %v2563_v54 = vpop.f32.mrf.mxu1  ;;  %v4044_v55 = vpop.eup %4043 }
 0x3cf   : > { %4067 = vrcp.f32 %v2863_v31  ;;  %v3536_v35 = vmul.f32 -1.442695, %v2812_v16  ;;  %v2813_v13 = vadd.f32 %v4833_v21, %v2563_v54  ;;  %v2868_v42 = vadd.f32 1.0, %v4044_v55  ;;  %v4899_v8 = vpop.permute.xlu0 %3011 }
 0x3d0   : > { %4069 = vpow2.f32 %v3535_v26  ;;  %v4046_v9 = vpop.eup %4045  ;;  %v3147_v21 = vmul.f32 %v4034_v38, %v3145_v57  ;;  %v4897_v38 = vpop.permute.xlu1 %2981  ;;  %vm3013_vm3 = vcmp.eq.s32.totalorder %v4899_v8, 1 }
 0x3d1   : > { %4071 = vrcp.f32 %v2864_v1  ;;  %v3537_v37 = vmul.f32 -1.442695, %v2813_v13  ;;  %v2869_v12 = vadd.f32 1.0, %v4046_v9  ;;  %vm2983_vm2 = vcmp.eq.s32.totalorder %v4897_v38, 1 }
 0x3d2   : > { %v4048_v39 = vpop.eup %4047  ;;  %4073 = vpow2.f32 %v3536_v35  ;;  %v3149_v31 = vadd.f32 %v3147_v21, %v4824_v53 }
 0x3d3   : > { %v4886_v11 = vpop.eup %4049  ;;  %4075 = vrcp.f32 %v2865_v43  ;;  %v2870_v45 = vadd.f32 1.0, %v4048_v39  ;;  %v2972_v39 = vsub.f32 %v4854_v25, %v4616_v30 }
 0x3d4   : > { %v4052_v27 = vpop.eup %4051  ;;  %4077 = vpow2.f32 %v3537_v37  ;;  %v4901_v43 = vpop.permute.xlu1 %3041 }
 0x3d5   : > { %v4888_v6 = vpop.eup %4053  ;;  %4079 = vrcp.f32 %v2866_v61  ;;  %v2871_v17 = vadd.f32 1.0, %v4052_v27  ;;  %v2942_v61 = vsub.f32 %v4849_v52, %v4629_v41  ;;  %v2943_v27 = vsub.f32 %v4851_v2, %v4620_v32 }
 0x3d6   : > { %v4056_v24 = vpop.eup %4055  ;;  %4081 = vrcp.f32 %v2867_v49  ;;  %v3002_v52 = vsub.f32 %v4861_v29, %v4676_v51  ;;  %v3033_v2 = vsub.f32 %v4869_v50, %v4672_v40  ;;  %vm3043_vm4 = vcmp.eq.s32.totalorder %v4901_v43, 1 }
 0x3d7   : > { %v4890_v58 = vpop.eup %4057  ;;  %4083 = vrcp.f32 %v2868_v42  ;;  %v2872_v44 = vadd.f32 1.0, %v4056_v24  ;;  %v4909_v42 = vpop.permute.xlu0 %3071  ;;  %v3003_v24 = vsub.f32 %v4864_v0, %v4669_v60  ;;  %v3092_v50 = vsub.f32 %v4881_v59, %v4695_v62 }
 0x3d8   : > { %v4892_v34 = vpop.eup %4059  ;;  %4085 = vrcp.f32 %v2869_v12  ;;  %v2973_v12 = vsub.f32 %v4859_v36, %v4623_v28  ;;  %v4918_v25 = vpop.permute.xlu1 %3101  ;;  %vm3073_vm5 = vcmp.eq.s32.totalorder %v4909_v42, 1  ;;  %v3123_v59 = vsub.f32 %v4890_v58, %v4719_v46 }
 0x3d9   : > { %v4062_v56 = vpop.eup %4061  ;;  %4087 = vrcp.f32 %v2870_v45  ;;  %vm3103_vm6 = vcmp.eq.s32.totalorder %v4918_v25, 1 }
 0x3da   : > { %v4064_v19 = vpop.eup %4063  ;;  %4089 = vrcp.f32 %v2872_v44  ;;  %v2873_v3 = vadd.f32 1.0, %v4062_v56 }
 0x3db   : > { %v4066_v63 = vpop.eup %4065  ;;  %4091 = vrcp.f32 %v2871_v17  ;;  %v2944_v21 = vmul.f32 %v4064_v19, %v2942_v61  ;;  %v3032_v17 = vsub.f32 %v4867_v15, %v4666_v22  ;;  %v3063_v19 = vsub.f32 %v4877_v47, %v4698_v5 }
 0x3dc   : > { %v4068_v7 = vpop.eup %4067  ;;  %4093 = vrcp.f32 %v2873_v3  ;;  %v2874_v1 = vadd.f32 1.0, %v4066_v63  ;;  %v3093_v63 = vsub.f32 %v4886_v11, %v4700_v20  ;;  %v3122_v47 = vsub.f32 %v4888_v6, %v4723_v4 }
 0x3dd   : > { %v4070_v26 = vpop.eup %4069  ;;  %4095 = vtanh.f32 %v3149_v31  ;;  %v2945_v29 = vmul.f32 %v4068_v7, %v2943_v27  ;;  %v3062_v31 = vsub.f32 %v4873_v48, %v4703_v14  ;;  %v2946_v7 = vadd.f32 %v2944_v21, %v4629_v41  ;;  %v3162_v21 = vpop.permute.xlu1 %3161 }
 0x3de   : > { %v4072_v16 = vpop.eup %4071  ;;  %4097 = vrcp.f32 %v2874_v1  ;;  %v2875_v10 = vadd.f32 1.0, %v4070_v26  ;;  %v3152_v41 = vsub.f32 %v4892_v34, %v4717_v33  ;;  %vm3163_vm8 = vcmp.eq.s32.totalorder %v3162_v21, 1 }
 0x3df   : > { %v4074_v54 = vpop.eup %4073  ;;  %v2974_v44 = vmul.f32 %v4072_v16, %v2972_v39  ;;  %v2947_v11 = vadd.f32 %v2945_v29, %v4620_v32  ;;  %v3132_v39 = vpop.permute.xlu0 %3131 }
 0x3e0   : > { %v4076_v53 = vpop.eup %4075  ;;  %4099 = vrcp.f32 %v2875_v10  ;;  %v2876_v35 = vadd.f32 1.0, %v4074_v54  ;;  %vm3133_vm7 = vcmp.eq.s32.totalorder %v3132_v39, 1 }
 0x3e1   : > { %v4078_v13 = vpop.eup %4077  ;;  %v2975_v0 = vmul.f32 %v4076_v53, %v2973_v12  ;;  %v2976_v10 = vadd.f32 %v2974_v44, %v4616_v30  ;;  %v2955_v12 = vsel %vm2953_vm1, %v2947_v11, 0.0 }
 0x3e2   : > { %v4080_v55 = vpop.eup %4079  ;;  %4101 = vrcp.f32 %v2876_v35  ;;  %v2877_v9 = vadd.f32 1.0, %v4078_v13 }
 0x3e3   : > { %v4082_v57 = vpop.eup %4081  ;;  %v3004_v56 = vmul.f32 %v4080_v55, %v3002_v52 }
 0x3e4   : > { %v4084_v37 = vpop.eup %4083  ;;  %4103 = vrcp.f32 %v2877_v9  ;;  %v3005_v48 = vmul.f32 %v4082_v57, %v3003_v24  ;;  %v2977_v9 = vadd.f32 %v2975_v0, %v4623_v28 }
 0x3e5   : > { %v4086_v49 = vpop.eup %4085  ;;  %v3034_v15 = vmul.f32 %v4084_v37, %v3032_v17  ;;  %v3006_v13 = vadd.f32 %v3004_v56, %v4676_v51  ;;  %v2954_v37 = vsel %vm2953_vm1, %v2946_v7, 0.0 }
 0x3e6   : > { %v4088_v45 = vpop.eup %4087  ;;  %v3035_v54 = vmul.f32 %v4086_v49, %v3033_v2  ;;  %v3007_v58 = vadd.f32 %v3005_v48, %v4669_v60  ;;  %v2984_v34 = vsel %vm2983_vm2, %v2976_v10, %v2954_v37 }
 0x3e7   : > { %v4090_v36 = vpop.eup %4089  ;;  %v3064_v26 = vmul.f32 %v4088_v45, %v3062_v31  ;;  %v3036_v6 = vadd.f32 %v3034_v15, %v4666_v22  ;;  %v3014_v60 = vsel %vm3013_vm3, %v3006_v13, %v2984_v34  ;;  %v2985_v45 = vsel %vm2983_vm2, %v2977_v9, %v2955_v12 }
 0x3e8   : > { %v4092_v3 = vpop.eup %4091  ;;  %v3094_v53 = vmul.f32 %v4090_v36, %v3092_v50  ;;  %v3037_v28 = vadd.f32 %v3035_v54, %v4672_v40  ;;  %v3015_v18 = vsel %vm3013_vm3, %v3007_v58, %v2985_v45 }
 0x3e9   : > { %v4094_v1 = vpop.eup %4093  ;;  %v3065_v55 = vmul.f32 %v4092_v3, %v3063_v19  ;;  %v3066_v32 = vadd.f32 %v3064_v26, %v4703_v14  ;;  %v3044_v40 = vsel %vm3043_vm4, %v3036_v6, %v3014_v60 }
 0x3ea   : > { %v4096_v16 = vpop.eup %4095  ;;  %v3095_v57 = vmul.f32 %v4094_v1, %v3093_v63  ;;  %v3096_v22 = vadd.f32 %v3094_v53, %v4695_v62  ;;  %v3045_v38 = vsel %vm3043_vm4, %v3037_v28, %v3015_v18 }
 0x3eb   : > { %v4098_v35 = vpop.eup %4097  ;;  %v3153_v51 = vsub.f32 %v4096_v16, %v4721_v23  ;;  %v3067_v14 = vadd.f32 %v3065_v55, %v4698_v5  ;;  %v3074_v5 = vsel %vm3073_vm5, %v3066_v32, %v3044_v40 }
 0x3ec   : > { %v3124_v30 = vmul.f32 %v4098_v35, %v3122_v47  ;;  %v3097_v62 = vadd.f32 %v3095_v57, %v4700_v20  ;;  %v3104_v2 = vsel %vm3103_vm6, %v3096_v22, %v3074_v5 }
 0x3ed   : > { %v4100_v61 = vpop.eup %4099  ;;  %v3075_v8 = vsel %vm3073_vm5, %v3067_v14, %v3045_v38 }
 0x3ee   : > { %v3125_v49 = vmul.f32 %v4100_v61, %v3123_v59  ;;  %v3126_v52 = vadd.f32 %v3124_v30, %v4723_v4  ;;  %v3105_v29 = vsel %vm3103_vm6, %v3097_v62, %v3075_v8 }
 0x3ef   : > { %v4102_v27 = vpop.eup %4101 }
 0x3f0   : > { %v3154_v24 = vmul.f32 %v4102_v27, %v3152_v41  ;;  %v3127_v4 = vadd.f32 %v3125_v49, %v4719_v46  ;;  %v3134_v36 = vsel %vm3133_vm7, %v3126_v52, %v3104_v2 }
 0x3f1   : > { %v4104_v17 = vpop.eup %4103 }
 0x3f2   : > { %v3155_v44 = vmul.f32 %v4104_v17, %v3153_v51  ;;  %v3156_v20 = vadd.f32 %v3154_v24, %v4717_v33  ;;  %v3135_v56 = vsel %vm3133_vm7, %v3127_v4, %v3105_v29 }
 0x3f4   : > { %v3157_v46 = vadd.f32 %v3155_v44, %v4721_v23  ;;  %v3164_v43 = vsel %vm3163_vm8, %v3156_v20, %v3134_v36 }
 0x3f5   : > { %v3166_v19 = vmul.f32 %v3164_v43, %v3164_v43 }
 0x3f6   : > { %v3165_v31 = vsel %vm3163_vm8, %v3157_v46, %v3135_v56 }
 0x3f7   : > { %v3167_v3 = vmul.f32 %v3165_v31, %v3165_v31 }
 0x3f9   : > { %v3168_v0 = vadd.f32 %v3167_v3, %v3166_v19 }
 0x3fb   : > { %3169 = vadd.xlane.f32.xlu0 %v3168_v0 }
 0x484   : > { %v3170_v33 = vpop.xlane.xlu0 %3169 }
 0x485   : > { %v3171_v15 = vadd.f32 1e-12, %v3170_v33 }
 0x487   : > { %4105 = vrsqrt.f32 %v3171_v15 }
 0x494   : > { %v4106_v42 = vpop.eup %4105 }
 0x495   : > { %v3173_v25 = vmul.f32 %v4106_v42, %v3164_v43  ;;  %v3174_v50 = vmul.f32 %v4106_v42, %v3165_v31 }
 0x497   : > { %3175 = vst [vmem:[%s314_s13] sm:$0xff] %v3173_v25  ;;  %3176 = vst [vmem:[%s314_s13 + $0x8] sm:$0xff] %v3174_v50 }
 0x498   : > { %4172 = shalt.err (!%p4169_p3)
}
 0x499   : > { %s4173_s29 = scalar_lea.hbm %s4989_s19, 256  ;;  %s4177_s14 = scalar_lea.hbm %s5031_s7, 512 }
 0x49a   : > { %p4174_p2 = scmp.ne.s32.totalorder %s4989_s19, %s4173_s29  ;;  %p4178_p6 = scmp.lt.s32.totalorder %s4989_s19, %s5031_s7 }
 0x49b   : > { %p4179_p9 = scmp.lt.s32.totalorder %s4177_s14, %s4173_s29 }
 0x49c   : > { %p4175_p4 = pnand %p4174_p2, %p4316_p5 }
 0x49d   : > { %p4180_p7 = por %p4179_p9, %p4178_p6 }
 0x49e   : > { %p4176_p13 = pneg %p4175_p4 }
 0x4a0   : > { %p4181_p10 = pnand %p4180_p7, %p4176_p13 }
 0x4a2   : > { %4184 = shalt.err (!%p4181_p10)
}
 0x4a3   : > { %3577 = dma.vmem_to_hbm [thread:$0]  (%p4316_p5), %s3193_s15, 256, %s4989_s19, %s3178_s20  }
 0x4a4 PF: > { %p3594_p12 = scmp.ge.s32.totalorder %s4227_s27, 2  ;;  %s3204_s16 = sand.u32 1, %s4215_s24  }
 0x4a5   : > { %p5041_p8 = scmp.ne.s32.totalorder %s5034_s12, 0  ;;  %s3205_s18 = scalar_lea.sflag [#allocation6], %s3204_s16 }
 0x4a7   : > { %p3587_p11 = pnand %p3594_p12, %p5041_p8 }
 0x4a9   : > { %p3588_p0 = pneg %p3587_p11 }
 0x4ab   : > { %4210 = dma.done.wait (%p3588_p0), %s3205_s18, 256  }
 0x4ac   : > { %4212 = vsyncadd (%p3588_p0), %s3205_s18, 4294967040  ;;  %p19_p1 = scmp.ge.s32.totalorder %s4303_s30, 4   ;;  %s5042_s24 = smov %s4219_s25 }
 0x4ad   : > { %s5043_s25 = smov %s4223_s26  ;;  %s5044_s26 = smov %s4314_s10 }
 0x4ae   : > { %s5045_s27 = smov %s4303_s30  ;;  %21 = sbr.rel (!%p19_p1) target bundleno = 5 (0x5), region = 95 }
 0x4b3   :  { %3210 = vsyncpa [#allocation5], 1 }
 0x4b4   :  { %3212 = vsyncpa [#allocation5 + $0x1], 1 }
 0x4b5   :  { %3213 = vsyncpa [#allocation8], 1 }
 0x4b6   :  { %3214 = vsyncpa [#allocation6], 1 }
 0x4b7   :  { %3216 = vsyncpa [#allocation6 + $0x1], 1 }

</bundles_post_ra>
